<compile_context>
chip_gen: v7x
topology: tpu7x:2x2x1
jax: 0.10.0
libtpu: 0.0.40
codegen_flags: <defaults>
</compile_context>

<pallas_src>
import jax
import jax.numpy as jnp
from jax import lax
from jax.experimental import pallas as pl
from jax.experimental.pallas import tpu as pltpu

# Lane-dense feature padding.  Keep 128 while hidden_dim <= 128 (padding to 256
# would only double zero-FLOPs); if hidden_dim ever grows past 128, re-pad to 256
# on v6e/v7x to recover full MXU width.
LANE = 128


# ---------------------------- fused forward kernel ---------------------------
def gconv_fused_kernel(a_ref, x_ref, w_ref, b_ref, c_ref, g_ref, s_ref):
    """Grid axis = GCN layer index (sequential dependency carried by g_ref).

    a_ref : (Np, Np)      bf16  normalized adjacency, VMEM-resident across layers
    x_ref : (Np, 128)     bf16  padded input features, resident
    w_ref : (1, 128, 128) bf16  this layer's padded weight (streamed)
    b_ref : (1, 1, 128)   f32   this layer's padded bias (streamed)
    c_ref : (128, 128)    bf16  folded Block_Hodge operator E.blockdiag(L0^2,L1^2).Ws
    g_ref : (Np, 128)     f32   g_emb output; constant out index_map => stays in
                                 VMEM across layers => doubles as activation Z
    s_ref : (Np, 128)     f32   s_emb output (written once, at layer 0)
    """
    layer = pl.program_id(0)

    @pl.when(layer == 0)
    def _():
        # Seed the resident activation with the padded input features.
        g_ref[...] = x_ref[...].astype(jnp.float32)

        # Block_Hodge branch: t = X @ C (C pre-folded in the wrapper), then torch
        # renorm_(p=2, dim=0, maxnorm=1).  Depends only on resident X and C, so
        # run it once on the first grid step; constant out index_map defers the
        # HBM writeback to grid end.
        t = jnp.dot(x_ref[...], c_ref[...], preferred_element_type=jnp.float32)
        ss = jnp.sum(t * t, axis=-1, keepdims=True)
        scale = jnp.where(ss > 1.0, lax.rsqrt(ss), 1.0)   # one EUP op, off the VALU path
        s_ref[...] = (t * scale).astype(s_ref.dtype)

    # GCN layer: relu(A @ (Z @ W) + b) — bf16 MXU operands, f32 accumulation.
    zw = jnp.dot(g_ref[...].astype(jnp.bfloat16), w_ref[0],
                 preferred_element_type=jnp.float32)
    h = jnp.dot(a_ref[...], zw.astype(jnp.bfloat16),
                preferred_element_type=jnp.float32) + b_ref[0]
    g_ref[...] = jnp.maximum(h, 0.0)                       # activation = ReLU (f32)


def _vmem_ceiling_bytes():
    """~75% of per-core VMEM: ~96 MiB on v5e/v6e (128 MiB), ~48 MiB on v7x (64 MiB)."""
    try:
        cap = pltpu.get_tpu_info().vmem_capacity_bytes
    except Exception:
        cap = 64 * 1024 * 1024
    return int(cap) * 3 // 4


def gconv_fused_forward(a_pad, x_pad, w_stack, b_stack, c_pad, n, hidden):
    num_layers = int(w_stack.shape[0])
    n_pad = int(a_pad.shape[0])

    flops = (2 * num_layers * (n_pad * LANE * LANE + n_pad * n_pad * LANE)
             + 2 * n_pad * LANE * LANE)
    bytes_accessed = ((a_pad.size + x_pad.size + w_stack.size + c_pad.size) * 2
                      + b_stack.size * 4 + 2 * n_pad * LANE * 4)

    def build_and_call(single_buffer_resident):
        # Resident-footprint-derived VMEM budget (A/X/C + streamed W/b double
        # buffers + the two resident f32 outputs), with headroom, clamped to the
        # per-generation ceiling.
        res_bufs = 1 if single_buffer_resident else 2
        resident = res_bufs * 2 * (n_pad * n_pad + n_pad * LANE + LANE * LANE)  # bf16
        streamed = 2 * (LANE * LANE * 2 + LANE * 4)                             # W,b x2 bufs
        outputs = 2 * n_pad * LANE * 4                                          # g,s f32
        need = resident + streamed + outputs
        vmem_limit = int(min(_vmem_ceiling_bytes(),
                             max(2 * need + (8 << 20), 32 << 20)))

        # Constant index_map across the layer grid => single-buffer these operands.
        res_kw = dict(pipeline_mode=pl.Buffered(1)) if single_buffer_resident else {}

        grid_spec = pltpu.PrefetchScalarGridSpec(
            num_scalar_prefetch=0,
            grid=(num_layers,),
            in_specs=(
                pl.BlockSpec((n_pad, n_pad), lambda l: (0, 0), **res_kw),   # A: resident
                pl.BlockSpec((n_pad, LANE), lambda l: (0, 0), **res_kw),    # X: resident
                pl.BlockSpec((1, LANE, LANE), lambda l: (l, 0, 0)),         # W_l: streamed
                pl.BlockSpec((1, 1, LANE), lambda l: (l, 0, 0)),            # b_l: streamed
                pl.BlockSpec((LANE, LANE), lambda l: (0, 0), **res_kw),     # C: resident
            ),
            out_specs=(
                pl.BlockSpec((n_pad, LANE), lambda l: (0, 0)),  # g: resident accumulator
                pl.BlockSpec((n_pad, LANE), lambda l: (0, 0)),  # s: written once
            ),
        )
        return pl.pallas_call(
            gconv_fused_kernel,
            out_shape=(jax.ShapeDtypeStruct((n_pad, LANE), jnp.float32),
                       jax.ShapeDtypeStruct((n_pad, LANE), jnp.float32)),
            grid_spec=grid_spec,
            compiler_params=pltpu.CompilerParams(
                # layer axis carries a sequential dependency through g_ref
                dimension_semantics=("arbitrary",),
                vmem_limit_bytes=vmem_limit,
            ),
            cost_estimate=pl.CostEstimate(
                flops=flops, transcendentals=n_pad, bytes_accessed=bytes_accessed),
        )(a_pad, x_pad, w_stack, b_stack, c_pad)

    try:
        g_pad, s_pad = build_and_call(True)
    except Exception:
        # Compatibility fallback: some JAX builds don't honor BlockSpec.pipeline_mode
        # in pallas_call; the only cost is double-buffered A/X/C VMEM.
        g_pad, s_pad = build_and_call(False)

    # Padded rows of g hold relu(bias) (padded A rows are zero): slice rows AND cols.
    return g_pad[:n, :hidden], s_pad[:n, :hidden]


# ---------------- glue: normalized adjacency + parameter setup ---------------
def gcn_normalized_adjacency(edge_index, num_nodes, edge_weight=None):
    # dense \hat{D}^{-1/2} (A + I) \hat{D}^{-1/2}; row i aggregates messages j->i
    src, dst = edge_index
    if edge_weight is None:
        edge_weight = jnp.ones(src.shape[0], dtype=jnp.float32)
    a = jnp.zeros((num_nodes, num_nodes), jnp.float32)
    a = a.at[dst, src].add(edge_weight)
    a = a + jnp.eye(num_nodes, dtype=jnp.float32)   # add_self_loops (fill value 1)
    deg = jnp.sum(a, axis=1)
    dinv = jnp.where(deg > 0, 1.0 / jnp.sqrt(deg), 0.0)
    return a * dinv[:, None] * dinv[None, :]


def _pad2(m, rows, cols):
    return jnp.pad(m, ((0, rows - m.shape[0]), (0, cols - m.shape[1])))


class GConvPallas:
    """JAX/Pallas port of GConv.forward (activation fixed to ReLU)."""

    def __init__(self, key, input_dim, hidden_dim, num_layers, size):
        assert input_dim <= LANE and hidden_dim <= LANE, "re-pad LANE for wider dims"
        keys = jax.random.split(key, 2 * num_layers + 2)
        self.hidden_dim = hidden_dim
        self.weights, self.biases = [], []
        dims = [input_dim] + [hidden_dim] * num_layers
        for li in range(num_layers):
            fan_in, fan_out = dims[li], dims[li + 1]
            w = jax.random.normal(keys[2 * li], (fan_in, fan_out),
                                  jnp.float32) / jnp.sqrt(fan_in)
            b = jnp.zeros((1, fan_out), jnp.float32)   # GCNConv bias
            self.weights.append(w)
            self.biases.append(b)
        self.embeddings_sim = jax.random.normal(
            keys[-2], (input_dim, 2 * size), jnp.float32) * 0.1
        self.weights_sim = jax.random.normal(
            keys[-1], (2 * size, hidden_dim), jnp.float32) * 0.1
        # parameters present in torch __init__ but unused in forward (kept for parity)
        self.weights_L_0 = jnp.zeros((size, hidden_dim), jnp.float32)
        self.weights_L_1 = jnp.zeros((size, hidden_dim), jnp.float32)
        self.weights_off_diagonal = jnp.zeros((size, size), jnp.float32)

        # lane-dense padded, bf16 parameter stacks (built once at init)
        self.w_stack = jnp.stack(
            [_pad2(w, LANE, LANE) for w in self.weights]).astype(jnp.bfloat16)
        self.b_stack = jnp.stack(
            [_pad2(b, 1, LANE) for b in self.biases]).astype(jnp.float32)

    def __call__(self, x, edge_index, org_edge_index, l0, l1, edge_weight=None):
        n = x.shape[0]
        # 128-align the node dim: full MXU tiles on the A @ (ZW) contraction and
        # unmasked vector stores; zero rows/cols of A keep real rows uncontaminated.
        n_pad = ((n + LANE - 1) // LANE) * LANE
        a = gcn_normalized_adjacency(edge_index, n, edge_weight)
        a_pad = _pad2(a, n_pad, n_pad).astype(jnp.bfloat16)
        x_pad = _pad2(x, n_pad, LANE).astype(jnp.bfloat16)

        # Block_Hodge re-association (tiny S-sized constant folds, f32, wrapper):
        #   E @ blockdiag(L0^2, L1^2) @ Ws  ==  E0 @ (L0^2 @ Ws_top) + E1 @ (L1^2 @ Ws_bot)
        s = l0.shape[0]
        m0 = (l0 @ l0) @ self.weights_sim[:s]
        m1 = (l1 @ l1) @ self.weights_sim[s:]
        c = self.embeddings_sim[:, :s] @ m0 + self.embeddings_sim[:, s:] @ m1
        c_pad = _pad2(c, LANE, LANE).astype(jnp.bfloat16)

        g_emb, s_emb = gconv_fused_forward(
            a_pad, x_pad, self.w_stack, self.b_stack, c_pad, n, self.hidden_dim)
        return [g_emb, s_emb]


if __name__ == "__main__":
    key = jax.random.PRNGKey(0)
    N, F_IN, HIDDEN, NUM_LAYERS, SIZE = 16, 8, 32, 2, 8

    k_x, k_l0, k_l1, k_model = jax.random.split(key, 4)
    x = jax.random.normal(k_x, (N, F_IN), jnp.float32)

    # undirected ring graph, both directions explicitly listed
    src = jnp.arange(N, dtype=jnp.int32)
    dst = (src + 1) % N
    edge_index = jnp.stack([jnp.concatenate([src, dst]),
                            jnp.concatenate([dst, src])], axis=0)
    org_edge_index = edge_index  # unused in forward, passed for signature parity

    L0 = jax.random.normal(k_l0, (SIZE, SIZE), jnp.float32) * 0.3
    L1 = jax.random.normal(k_l1, (SIZE, SIZE), jnp.float32) * 0.3

    model = GConvPallas(k_model, F_IN, HIDDEN, NUM_LAYERS, SIZE)
    g_emb, s_emb = model(x, edge_index, org_edge_index, L0, L1)
    jax.block_until_ready(g_emb)
    jax.block_until_ready(s_emb)
    assert g_emb.shape == (N, HIDDEN) and s_emb.shape == (N, HIDDEN)

    # pure-JAX f32 reference following the original torch op order
    a_ref = gcn_normalized_adjacency(edge_index, N)
    z_ref = x
    for w, b in zip(model.weights, model.biases):
        z_ref = jnp.maximum(a_ref @ (z_ref @ w) + b, 0.0)
    l0r, l1r = L0 @ L0, L1 @ L1
    zeros = jnp.zeros_like(L0)
    sim_block = jnp.concatenate(
        [jnp.concatenate([l0r, zeros], axis=1),
         jnp.concatenate([zeros, l1r], axis=1)], axis=0)
    t_ref = (x @ model.embeddings_sim) @ sim_block @ model.weights_sim
    nrm = jnp.linalg.norm(t_ref, axis=-1, keepdims=True)
    s_emb_ref = t_ref * jnp.where(nrm > 1.0, 1.0 / (nrm + 1e-7), 1.0)

    # loose tolerance: kernel uses bf16 MXU operands with f32 accumulation
    assert jnp.allclose(g_emb, z_ref, rtol=0.1, atol=0.1), "g_emb mismatch"
    assert jnp.allclose(s_emb, s_emb_ref, rtol=0.1, atol=0.1), "s_emb mismatch"
    print("KERNEL_OK")
</pallas_src>

<mosaic_0001>
module attributes {stable_mosaic.version = 11 : i64} {
  func.func @gconv_fused_kernel(%arg0: i32, %arg1: memref<128x128xbf16, #tpu.memory_space<vmem>>, %arg2: memref<128x128xbf16, #tpu.memory_space<vmem>>, %arg3: memref<1x128x128xbf16, #tpu.memory_space<vmem>>, %arg4: memref<1x1x128xf32, #tpu.memory_space<vmem>>, %arg5: memref<128x128xbf16, #tpu.memory_space<vmem>>, %arg6: memref<128x128xf32, #tpu.memory_space<vmem>>, %arg7: memref<128x128xf32, #tpu.memory_space<vmem>>) attributes {dimension_semantics = [#tpu.dimension_semantics<arbitrary>], iteration_bounds = array<i64: 2>, scalar_prefetch = 0 : i64, scratch_operands = 0 : i64, tpu.core_type = #tpu.core_type<tc>, window_params = [{pipeline_mode = #tpu.pipeline_mode<synchronous>, transform_indices = @transform_0, window_bounds = array<i64: 128, 128>}, {pipeline_mode = #tpu.pipeline_mode<synchronous>, transform_indices = @transform_1, window_bounds = array<i64: 128, 128>}, {transform_indices = @transform_2, window_bounds = array<i64: 1, 128, 128>}, {transform_indices = @transform_3, window_bounds = array<i64: 1, 1, 128>}, {pipeline_mode = #tpu.pipeline_mode<synchronous>, transform_indices = @transform_4, window_bounds = array<i64: 128, 128>}, {pipeline_mode = #tpu.pipeline_mode<synchronous>, transform_indices = @transform_5, window_bounds = array<i64: 128, 128>}, {pipeline_mode = #tpu.pipeline_mode<synchronous>, transform_indices = @transform_6, window_bounds = array<i64: 128, 128>}]} {
    %c0_i32 = arith.constant 0 : i32
    %0 = arith.cmpi eq, %arg0, %c0_i32 : i32
    %1 = arith.extui %0 : i1 to i32
    %c0_i32_0 = arith.constant 0 : i32
    %2 = arith.cmpi ne, %1, %c0_i32_0 : i32
    scf.if %2 {
      %c0_14 = arith.constant 0 : index
      %c0_15 = arith.constant 0 : index
      %18 = vector.load %arg2[%c0_14, %c0_15] : memref<128x128xbf16, #tpu.memory_space<vmem>>, vector<128x128xbf16>
      %19 = arith.extf %18 : vector<128x128xbf16> to vector<128x128xf32>
      %c0_16 = arith.constant 0 : index
      %c0_17 = arith.constant 0 : index
      %20 = vector.load %arg6[%c0_16, %c0_17] : memref<128x128xf32, #tpu.memory_space<vmem>>, vector<128x128xf32>
      tpu.vector_store %arg6[%c0_16, %c0_17], %19 {strides = array<i32>} : memref<128x128xf32, #tpu.memory_space<vmem>>, vector<128x128xf32>,
      %c0_18 = arith.constant 0 : index
      %c0_19 = arith.constant 0 : index
      %21 = vector.load %arg2[%c0_18, %c0_19] : memref<128x128xbf16, #tpu.memory_space<vmem>>, vector<128x128xbf16>
      %c0_20 = arith.constant 0 : index
      %c0_21 = arith.constant 0 : index
      %22 = vector.load %arg5[%c0_20, %c0_21] : memref<128x128xbf16, #tpu.memory_space<vmem>>, vector<128x128xbf16>
      %cst_22 = arith.constant dense<0.000000e+00> : vector<128x128xf32>
      %23 = tpu.matmul %21, %22, %cst_22 {dimension_numbers = #tpu.dot_dimension_numbers<[1], [0], [0], [1], [0, 0, 1, 1], [], []>} : vector<128x128xbf16>, vector<128x128xbf16>, vector<128x128xf32> -> vector<128x128xf32>
      %24 = arith.mulf %23, %23 : vector<128x128xf32>
      %cst_23 = arith.constant dense<0.000000e+00> : vector<128xf32>
      %25 = vector.multi_reduction <add>, %24, %cst_23 [1] : vector<128x128xf32> to vector<128xf32>
      %26 = vector.shape_cast %25 : vector<128xf32> to vector<128x1xf32>
      %cst_24 = arith.constant 1.000000e+00 : f32
      %27 = vector.broadcast %cst_24 : f32 to vector<128x1xf32>
      %28 = arith.cmpf ogt, %26, %27 : vector<128x1xf32>
      %29 = math.rsqrt %26 : vector<128x1xf32>
      %cst_25 = arith.constant 1.000000e+00 : f32
      %30 = vector.broadcast %cst_25 : f32 to vector<128x1xf32>
      %31 = arith.select %28, %29, %30 : vector<128x1xi1>, vector<128x1xf32>
      %32 = vector.broadcast %31 : vector<128x1xf32> to vector<128x128xf32>
      %33 = arith.mulf %23, %32 : vector<128x128xf32>
      %c0_26 = arith.constant 0 : index
      %c0_27 = arith.constant 0 : index
      %34 = vector.load %arg7[%c0_26, %c0_27] : memref<128x128xf32, #tpu.memory_space<vmem>>, vector<128x128xf32>
      tpu.vector_store %arg7[%c0_26, %c0_27], %33 {strides = array<i32>} : memref<128x128xf32, #tpu.memory_space<vmem>>, vector<128x128xf32>,
    } else {
    }
    %c0 = arith.constant 0 : index
    %c0_1 = arith.constant 0 : index
    %3 = vector.load %arg6[%c0, %c0_1] : memref<128x128xf32, #tpu.memory_space<vmem>>, vector<128x128xf32>
    %4 = arith.truncf %3 : vector<128x128xf32> to vector<128x128xbf16>
    %c0_2 = arith.constant 0 : index
    %c0_3 = arith.constant 0 : index
    %c0_4 = arith.constant 0 : index
    %5 = vector.load %arg3[%c0_2, %c0_3, %c0_4] : memref<1x128x128xbf16, #tpu.memory_space<vmem>>, vector<1x128x128xbf16>
    %6 = vector.shape_cast %5 : vector<1x128x128xbf16> to vector<128x128xbf16>
    %cst = arith.constant dense<0.000000e+00> : vector<128x128xf32>
    %7 = tpu.matmul %4, %6, %cst {dimension_numbers = #tpu.dot_dimension_numbers<[1], [0], [0], [1], [0, 0, 1, 1], [], []>} : vector<128x128xbf16>, vector<128x128xbf16>, vector<128x128xf32> -> vector<128x128xf32>
    %c0_5 = arith.constant 0 : index
    %c0_6 = arith.constant 0 : index
    %8 = vector.load %arg1[%c0_5, %c0_6] : memref<128x128xbf16, #tpu.memory_space<vmem>>, vector<128x128xbf16>
    %9 = arith.truncf %7 : vector<128x128xf32> to vector<128x128xbf16>
    %cst_7 = arith.constant dense<0.000000e+00> : vector<128x128xf32>
    %10 = tpu.matmul %8, %9, %cst_7 {dimension_numbers = #tpu.dot_dimension_numbers<[1], [0], [0], [1], [0, 0, 1, 1], [], []>} : vector<128x128xbf16>, vector<128x128xbf16>, vector<128x128xf32> -> vector<128x128xf32>
    %c0_8 = arith.constant 0 : index
    %c0_9 = arith.constant 0 : index
    %c0_10 = arith.constant 0 : index
    %11 = vector.load %arg4[%c0_8, %c0_9, %c0_10] : memref<1x1x128xf32, #tpu.memory_space<vmem>>, vector<1x1x128xf32>
    %12 = vector.shape_cast %11 : vector<1x1x128xf32> to vector<1x128xf32>
    %13 = vector.broadcast %12 : vector<1x128xf32> to vector<128x128xf32>
    %14 = arith.addf %10, %13 : vector<128x128xf32>
    %cst_11 = arith.constant 0.000000e+00 : f32
    %15 = vector.broadcast %cst_11 : f32 to vector<128x128xf32>
    %16 = arith.maximumf %14, %15 : vector<128x128xf32>
    %c0_12 = arith.constant 0 : index
    %c0_13 = arith.constant 0 : index
    %17 = vector.load %arg6[%c0_12, %c0_13] : memref<128x128xf32, #tpu.memory_space<vmem>>, vector<128x128xf32>
    tpu.vector_store %arg6[%c0_12, %c0_13], %16 {strides = array<i32>} : memref<128x128xf32, #tpu.memory_space<vmem>>, vector<128x128xf32>,
    return
  }
  func.func @transform_0(%arg0: i32) -> (i32, i32) {
    %c0_i32 = arith.constant 0 : i32
    %c0_i32_0 = arith.constant 0 : i32
    %c0_i32_1 = arith.constant 0 : i32
    return %c0_i32, %c0_i32_0 : i32, i32
  }
  func.func @transform_1(%arg0: i32) -> (i32, i32) {
    %c0_i32 = arith.constant 0 : i32
    %c0_i32_0 = arith.constant 0 : i32
    %c0_i32_1 = arith.constant 0 : i32
    return %c0_i32, %c0_i32_0 : i32, i32
  }
  func.func @transform_2(%arg0: i32) -> (i32, i32, i32) {
    %c0_i32 = arith.constant 0 : i32
    %c0_i32_0 = arith.constant 0 : i32
    %c0_i32_1 = arith.constant 0 : i32
    return %arg0, %c0_i32, %c0_i32_0 : i32, i32, i32
  }
  func.func @transform_3(%arg0: i32) -> (i32, i32, i32) {
    %c0_i32 = arith.constant 0 : i32
    %c0_i32_0 = arith.constant 0 : i32
    %c0_i32_1 = arith.constant 0 : i32
    return %arg0, %c0_i32, %c0_i32_0 : i32, i32, i32
  }
  func.func @transform_4(%arg0: i32) -> (i32, i32) {
    %c0_i32 = arith.constant 0 : i32
    %c0_i32_0 = arith.constant 0 : i32
    %c0_i32_1 = arith.constant 0 : i32
    return %c0_i32, %c0_i32_0 : i32, i32
  }
  func.func @transform_5(%arg0: i32) -> (i32, i32) {
    %c0_i32 = arith.constant 0 : i32
    %c0_i32_0 = arith.constant 0 : i32
    %c0_i32_1 = arith.constant 0 : i32
    return %c0_i32, %c0_i32_0 : i32, i32
  }
  func.func @transform_6(%arg0: i32) -> (i32, i32) {
    %c0_i32 = arith.constant 0 : i32
    %c0_i32_0 = arith.constant 0 : i32
    %c0_i32_1 = arith.constant 0 : i32
    return %c0_i32, %c0_i32_0 : i32, i32
  }
}

module attributes {stable_mosaic.version = 11 : i64} {
  func.func @gconv_fused_kernel(%arg0: i32, %arg1: memref<128x128xbf16, #tpu.memory_space<vmem>>, %arg2: memref<128x128xbf16, #tpu.memory_space<vmem>>, %arg3: memref<1x128x128xbf16, #tpu.memory_space<vmem>>, %arg4: memref<1x1x128xf32, #tpu.memory_space<vmem>>, %arg5: memref<128x128xbf16, #tpu.memory_space<vmem>>, %arg6: memref<128x128xf32, #tpu.memory_space<vmem>>, %arg7: memref<128x128xf32, #tpu.memory_space<vmem>>) attributes {dimension_semantics = [#tpu.dimension_semantics<arbitrary>], iteration_bounds = array<i64: 2>, scalar_prefetch = 0 : i64, scratch_operands = 0 : i64, tpu.core_type = #tpu.core_type<tc>, window_params = [{pipeline_mode = #tpu.pipeline_mode<synchronous>, transform_indices = @transform_0, window_bounds = array<i64: 128, 128>}, {pipeline_mode = #tpu.pipeline_mode<synchronous>, transform_indices = @transform_1, window_bounds = array<i64: 128, 128>}, {transform_indices = @transform_2, window_bounds = array<i64: 1, 128, 128>}, {transform_indices = @transform_3, window_bounds = array<i64: 1, 1, 128>}, {pipeline_mode = #tpu.pipeline_mode<synchronous>, transform_indices = @transform_4, window_bounds = array<i64: 128, 128>}, {pipeline_mode = #tpu.pipeline_mode<synchronous>, transform_indices = @transform_5, window_bounds = array<i64: 128, 128>}, {pipeline_mode = #tpu.pipeline_mode<synchronous>, transform_indices = @transform_6, window_bounds = array<i64: 128, 128>}]} {
    %c0_i32 = arith.constant 0 : i32
    %0 = arith.cmpi eq, %arg0, %c0_i32 : i32
    %1 = arith.extui %0 : i1 to i32
    %c0_i32_0 = arith.constant 0 : i32
    %2 = arith.cmpi ne, %1, %c0_i32_0 : i32
    scf.if %2 {
      %c0_14 = arith.constant 0 : index
      %c0_15 = arith.constant 0 : index
      %18 = vector.load %arg2[%c0_14, %c0_15] : memref<128x128xbf16, #tpu.memory_space<vmem>>, vector<128x128xbf16>
      %19 = arith.extf %18 : vector<128x128xbf16> to vector<128x128xf32>
      %c0_16 = arith.constant 0 : index
      %c0_17 = arith.constant 0 : index
      %20 = vector.load %arg6[%c0_16, %c0_17] : memref<128x128xf32, #tpu.memory_space<vmem>>, vector<128x128xf32>
      tpu.vector_store %arg6[%c0_16, %c0_17], %19 {strides = array<i32>} : memref<128x128xf32, #tpu.memory_space<vmem>>, vector<128x128xf32>,
      %c0_18 = arith.constant 0 : index
      %c0_19 = arith.constant 0 : index
      %21 = vector.load %arg2[%c0_18, %c0_19] : memref<128x128xbf16, #tpu.memory_space<vmem>>, vector<128x128xbf16>
      %c0_20 = arith.constant 0 : index
      %c0_21 = arith.constant 0 : index
      %22 = vector.load %arg5[%c0_20, %c0_21] : memref<128x128xbf16, #tpu.memory_space<vmem>>, vector<128x128xbf16>
      %cst_22 = arith.constant dense<0.000000e+00> : vector<128x128xf32>
      %23 = tpu.matmul %21, %22, %cst_22 {dimension_numbers = #tpu.dot_dimension_numbers<[1], [0], [0], [1], [0, 0, 1, 1], [], []>} : vector<128x128xbf16>, vector<128x128xbf16>, vector<128x128xf32> -> vector<128x128xf32>
      %24 = arith.mulf %23, %23 : vector<128x128xf32>
      %cst_23 = arith.constant dense<0.000000e+00> : vector<128xf32>
      %25 = vector.multi_reduction <add>, %24, %cst_23 [1] : vector<128x128xf32> to vector<128xf32>
      %26 = vector.shape_cast %25 : vector<128xf32> to vector<128x1xf32>
      %cst_24 = arith.constant 1.000000e+00 : f32
      %27 = vector.broadcast %cst_24 : f32 to vector<128x1xf32>
      %28 = arith.cmpf ogt, %26, %27 : vector<128x1xf32>
      %29 = math.rsqrt %26 : vector<128x1xf32>
      %cst_25 = arith.constant 1.000000e+00 : f32
      %30 = vector.broadcast %cst_25 : f32 to vector<128x1xf32>
      %31 = arith.select %28, %29, %30 : vector<128x1xi1>, vector<128x1xf32>
      %32 = vector.broadcast %31 : vector<128x1xf32> to vector<128x128xf32>
      %33 = arith.mulf %23, %32 : vector<128x128xf32>
      %c0_26 = arith.constant 0 : index
      %c0_27 = arith.constant 0 : index
      %34 = vector.load %arg7[%c0_26, %c0_27] : memref<128x128xf32, #tpu.memory_space<vmem>>, vector<128x128xf32>
      tpu.vector_store %arg7[%c0_26, %c0_27], %33 {strides = array<i32>} : memref<128x128xf32, #tpu.memory_space<vmem>>, vector<128x128xf32>,
    } else {
    }
    %c0 = arith.constant 0 : index
    %c0_1 = arith.constant 0 : index
    %3 = vector.load %arg6[%c0, %c0_1] : memref<128x128xf32, #tpu.memory_space<vmem>>, vector<128x128xf32>
    %4 = arith.truncf %3 : vector<128x128xf32> to vector<128x128xbf16>
    %c0_2 = arith.constant 0 : index
    %c0_3 = arith.constant 0 : index
    %c0_4 = arith.constant 0 : index
    %5 = vector.load %arg3[%c0_2, %c0_3, %c0_4] : memref<1x128x128xbf16, #tpu.memory_space<vmem>>, vector<1x128x128xbf16>
    %6 = vector.shape_cast %5 : vector<1x128x128xbf16> to vector<128x128xbf16>
    %cst = arith.constant dense<0.000000e+00> : vector<128x128xf32>
    %7 = tpu.matmul %4, %6, %cst {dimension_numbers = #tpu.dot_dimension_numbers<[1], [0], [0], [1], [0, 0, 1, 1], [], []>} : vector<128x128xbf16>, vector<128x128xbf16>, vector<128x128xf32> -> vector<128x128xf32>
    %c0_5 = arith.constant 0 : index
    %c0_6 = arith.constant 0 : index
    %8 = vector.load %arg1[%c0_5, %c0_6] : memref<128x128xbf16, #tpu.memory_space<vmem>>, vector<128x128xbf16>
    %9 = arith.truncf %7 : vector<128x128xf32> to vector<128x128xbf16>
    %cst_7 = arith.constant dense<0.000000e+00> : vector<128x128xf32>
    %10 = tpu.matmul %8, %9, %cst_7 {dimension_numbers = #tpu.dot_dimension_numbers<[1], [0], [0], [1], [0, 0, 1, 1], [], []>} : vector<128x128xbf16>, vector<128x128xbf16>, vector<128x128xf32> -> vector<128x128xf32>
    %c0_8 = arith.constant 0 : index
    %c0_9 = arith.constant 0 : index
    %c0_10 = arith.constant 0 : index
    %11 = vector.load %arg4[%c0_8, %c0_9, %c0_10] : memref<1x1x128xf32, #tpu.memory_space<vmem>>, vector<1x1x128xf32>
    %12 = vector.shape_cast %11 : vector<1x1x128xf32> to vector<1x128xf32>
    %13 = vector.broadcast %12 : vector<1x128xf32> to vector<128x128xf32>
    %14 = arith.addf %10, %13 : vector<128x128xf32>
    %cst_11 = arith.constant 0.000000e+00 : f32
    %15 = vector.broadcast %cst_11 : f32 to vector<128x128xf32>
    %16 = arith.maximumf %14, %15 : vector<128x128xf32>
    %c0_12 = arith.constant 0 : index
    %c0_13 = arith.constant 0 : index
    %17 = vector.load %arg6[%c0_12, %c0_13] : memref<128x128xf32, #tpu.memory_space<vmem>>, vector<128x128xf32>
    tpu.vector_store %arg6[%c0_12, %c0_13], %16 {strides = array<i32>} : memref<128x128xf32, #tpu.memory_space<vmem>>, vector<128x128xf32>,
    return
  }
  func.func @transform_0(%arg0: i32) -> (i32, i32) {
    %c0_i32 = arith.constant 0 : i32
    %c0_i32_0 = arith.constant 0 : i32
    %c0_i32_1 = arith.constant 0 : i32
    return %c0_i32, %c0_i32_0 : i32, i32
  }
  func.func @transform_1(%arg0: i32) -> (i32, i32) {
    %c0_i32 = arith.constant 0 : i32
    %c0_i32_0 = arith.constant 0 : i32
    %c0_i32_1 = arith.constant 0 : i32
    return %c0_i32, %c0_i32_0 : i32, i32
  }
  func.func @transform_2(%arg0: i32) -> (i32, i32, i32) {
    %c0_i32 = arith.constant 0 : i32
    %c0_i32_0 = arith.constant 0 : i32
    %c0_i32_1 = arith.constant 0 : i32
    return %arg0, %c0_i32, %c0_i32_0 : i32, i32, i32
  }
  func.func @transform_3(%arg0: i32) -> (i32, i32, i32) {
    %c0_i32 = arith.constant 0 : i32
    %c0_i32_0 = arith.constant 0 : i32
    %c0_i32_1 = arith.constant 0 : i32
    return %arg0, %c0_i32, %c0_i32_0 : i32, i32, i32
  }
  func.func @transform_4(%arg0: i32) -> (i32, i32) {
    %c0_i32 = arith.constant 0 : i32
    %c0_i32_0 = arith.constant 0 : i32
    %c0_i32_1 = arith.constant 0 : i32
    return %c0_i32, %c0_i32_0 : i32, i32
  }
  func.func @transform_5(%arg0: i32) -> (i32, i32) {
    %c0_i32 = arith.constant 0 : i32
    %c0_i32_0 = arith.constant 0 : i32
    %c0_i32_1 = arith.constant 0 : i32
    return %c0_i32, %c0_i32_0 : i32, i32
  }
  func.func @transform_6(%arg0: i32) -> (i32, i32) {
    %c0_i32 = arith.constant 0 : i32
    %c0_i32_0 = arith.constant 0 : i32
    %c0_i32_1 = arith.constant 0 : i32
    return %c0_i32, %c0_i32_0 : i32, i32
  }
}

</mosaic_0001>

<bundles_post_ra>
// kernel: tpu_custom_call.1
= control target key start
LH: loop header
LB: loop body
LE: loop exit
PB: predicated region body
PF: predicated region fallthrough
CT: control target
= control target key end

     0   :  { %s2270_s0 = inlined_call_operand.hbm [shape: bf16[128,128], index: 0, kind: input, shape index: {}]   ;;  %s2271_s1 = inlined_call_operand.hbm [shape: bf16[128,128], index: 1, kind: input, shape index: {}]   ;;  %s2272_s2 = inlined_call_operand.hbm [shape: bf16[2,128,128], index: 2, kind: input, shape index: {}]   ;;  %s2273_s3 = inlined_call_operand.vmem [shape: f32[2,1,128], index: 3, kind: input, shape index: {}]   ;;  %s2274_s4 = inlined_call_operand.hbm [shape: bf16[128,128], index: 4, kind: input, shape index: {}]   ;;  %s2275_s5 = inlined_call_operand.hbm [shape: f32[128,128], index: 5, kind: output, shape index: {0}]   ;;  %s2276_s6 = inlined_call_operand.hbm [shape: f32[128,128], index: 6, kind: output, shape index: {1}]  }
   0x1   :  { %2284 = sst [smem:[#allocation20_spill]] %s2275_s5 }
   0x2   :  { %12 = vsyncpa [#allocation3], 0 }
   0x3   :  { %13 = vsyncpa [#allocation6], 0 }
   0x4   :  { %14 = vsyncpa [#allocation4], 0 }
   0x5   :  { %15 = vsyncpa [#allocation11], 0  ;;  %s1904_s21 = smov 0   ;;  %s1906_s22 = smov 0  }
   0x6   :  { %s1908_s23 = smov 0   ;;  %s1910_s24 = smov 0  }
   0x7 LB: > { %s1923_s25 = sadd.s32 4294967295, %s1857_s24   ;;  %s1926_s26 = sadd.s32 1, %s1857_s24   ;;  %s1857_s24 = sphi %s1910_s24, %s2304_s24   ;;  %s1853_s23 = sphi %s1908_s23, %s2308_s23   ;;  %s1849_s22 = sphi %s1906_s22, %s2307_s22   ;;  %s1845_s21 = sphi %s1904_s21, %s2306_s21  }
   0x8   : > { %2285 = sst [smem:[#allocation18_spill]] %s1926_s26  ;;  %s67_s27 = ssub.s32 %s1857_s24, %s1926_s26 }
   0x9   : > { %s70_s28 = sadd.s32 1, %s1853_s23  ;;  %p68_p0 = scmp.eq.s32.totalorder %s67_s27, 0 }
   0xa   : > { %p77_p1 = scmp.ne.s32.totalorder %s1853_s23, %s1849_s22  ;;  %p78_p2 = scmp.eq.s32.totalorder %s1857_s24, 0 }
   0xb   : > { %p83_p3 = scmp.ne.s32.totalorder %s1849_s22, %s1845_s21  ;;  %p2277_p5 = scmp.eq.s32.totalorder %s1923_s25, 0 }
   0xc   : > { %s1936_s29 = scalar_select %p68_p0, %s1853_s23, %s70_s28  }
   0xd   : > { %p1938_p4 = por %p78_p2, %p77_p1  ;;  %p1232_p6 = scmp.ge.s32.totalorder %s1857_s24, 1 }
   0xe   : > { %2286 = sst [smem:[#allocation19_spill]] %s1936_s29  ;;  %p183_p7 = scmp.lt.s32.totalorder %s1857_s24, 3 }
   0xf   : > { %p1947_p8 = por %p2277_p5, %p83_p3  ;;  %s1859_s9 = smov [#allocation2]  }
  0x10   : > { %p1952_p10 = pnand %p1232_p6, %p183_p7  ;;  %s195_s10 = sshll.u32 %s1859_s9, 4  ;;  %s196_s10 = int_to_ptr.vmem [resolvable:$true] %s195_s10 }
  0x11   : > { %s2288_s7 = scalar_select %p1947_p8, 1, 0 }
  0x12   : > { %s2289_s8 = scalar_select %p1952_p10, 1, 0 }
  0x13   : > { %p1507_p11 = pneg %p1952_p10  ;;  %p1524_p13 = scmp.lt.s32.totalorder %s1857_s24, 2 }
  0x14   : > { %s1637_s15 = scalar_lea.hbm %s2270_s0, 1024 }
  0x15   : > { %p1960_p12 = pnand %p1507_p11, %p2277_p5  ;;  %p1967_p0 = pnand %p1524_p13, %p1938_p4 }
  0x16   : > { %p1638_p1 = scmp.ne.s32.totalorder %s2270_s0, %s1637_s15  ;;  %p1644_p6 = scmp.lt.u32.totalorder %s1637_s15, %s2270_s0 }
  0x17   : > { %s2291_s12 = scalar_select %p1967_p0, 1, 0 }
  0x18   : > { %p1979_p2 = pneg %p1960_p12 }
  0x1a   : > { %p1640_p3 = pnand %p1979_p2, %p1638_p1 }
  0x1c   : > { %p1641_p4 = pneg %p1640_p3 }
  0x1e   : > { %p1646_p7 = pnand %p1644_p6, %p1641_p4 }
  0x20   : > { %1649 = shalt.err (!%p1646_p7)
}
  0x21   : > { %s1650_s21 = scalar_lea.vmem %s196_s10, 1024  ;;  %p1658_p5 = scmp.lt.s32.totalorder %s196_s10, %s196_s10 }
  0x22   : > { %p1651_p11 = scmp.ne.s32.totalorder %s196_s10, %s1650_s21  ;;  %p1659_p8 = scmp.lt.s32.totalorder %s1650_s21, %s1650_s21 }
  0x24   : > { %p1653_p13 = pnand %p1651_p11, %p1979_p2  ;;  %p1660_p10 = por %p1659_p8, %p1658_p5 }
  0x26   : > { %p1654_p9 = pneg %p1653_p13 }
  0x28   : > { %p1661_p0 = pnand %p1660_p10, %p1654_p9 }
  0x2a   : > { %1664 = shalt.err (!%p1661_p0)
}
  0x2b   : > { %s1860_s27 = smov 64   ;;  %s1861_s28 = smov 4  }
  0x2c   : > { %1510 = dma.hbm_to_vmem [thread:$0]  (!%p1960_p12), %s2270_s0, 1024, %s196_s10, [#allocation3], %s1860_s27, %s1860_s27, %s1861_s28  }
  0x2d   : > { %s1862_s13 = smov [#allocation5]   ;;  %s1863_s15 = smov [#allocation8]  }
  0x2e   : > { %s208_s14 = sshll.u32 %s1862_s13, 4  ;;  %s221_s16 = sshll.u32 %s1863_s15, 4  ;;  %s209_s14 = int_to_ptr.vmem [resolvable:$true] %s208_s14  ;;  %s222_s16 = int_to_ptr.vmem [resolvable:$true] %s221_s16 }
  0x2f   : > { %s1665_s20 = scalar_lea.hbm %s2271_s1, 1024 }
  0x30   : > { %p1666_p5 = scmp.ne.s32.totalorder %s2271_s1, %s1665_s20  ;;  %p1672_p10 = scmp.lt.u32.totalorder %s1665_s20, %s2271_s1 }
  0x32   : > { %p1668_p8 = pnand %p1666_p5, %p1979_p2 }
  0x34   : > { %p1669_p9 = pneg %p1668_p8 }
  0x36   : > { %p1674_p0 = pnand %p1672_p10, %p1669_p9 }
  0x38   : > { %1677 = shalt.err (!%p1674_p0)
}
  0x39   : > { %s1678_s10 = scalar_lea.vmem %s209_s14, 1024  ;;  %p1686_p6 = scmp.lt.s32.totalorder %s209_s14, %s209_s14 }
  0x3a   : > { %p1679_p1 = scmp.ne.s32.totalorder %s209_s14, %s1678_s10  ;;  %p1687_p7 = scmp.lt.s32.totalorder %s1678_s10, %s1678_s10 }
  0x3c   : > { %p1681_p3 = pnand %p1679_p1, %p1979_p2  ;;  %p1688_p11 = por %p1687_p7, %p1686_p6 }
  0x3e   : > { %p1682_p4 = pneg %p1681_p3 }
  0x40   : > { %p1689_p13 = pnand %p1688_p11, %p1682_p4 }
  0x42   : > { %1692 = shalt.err (!%p1689_p13)
}
  0x43   : > { %1513 = dma.hbm_to_vmem [thread:$0]  (!%p1960_p12), %s2271_s1, 1024, %s209_s14, [#allocation6], %s1860_s27, %s1860_s27, %s1861_s28  }
  0x44   : > { %s235_s29 = sand.u32 1, %s1857_s24   ;;  %s1693_s13 = scalar_lea.hbm %s2274_s4, 1024 }
  0x45   : > { %p1694_p5 = scmp.ne.s32.totalorder %s2274_s4, %s1693_s13  ;;  %p1700_p10 = scmp.lt.u32.totalorder %s1693_s13, %s2274_s4 }
  0x47   : > { %p1696_p8 = pnand %p1694_p5, %p1979_p2 }
  0x49   : > { %p1697_p9 = pneg %p1696_p8 }
  0x4b   : > { %p1702_p0 = pnand %p1700_p10, %p1697_p9 }
  0x4d   : > { %1705 = shalt.err (!%p1702_p0)
}
  0x4e   : > { %s1706_s14 = scalar_lea.vmem %s222_s16, 1024  ;;  %p1714_p6 = scmp.lt.s32.totalorder %s222_s16, %s222_s16 }
  0x4f   : > { %p1707_p1 = scmp.ne.s32.totalorder %s222_s16, %s1706_s14  ;;  %p1715_p7 = scmp.lt.s32.totalorder %s1706_s14, %s1706_s14 }
  0x51   : > { %p1709_p3 = pnand %p1707_p1, %p1979_p2  ;;  %p1716_p11 = por %p1715_p7, %p1714_p6 }
  0x53   : > { %p1710_p4 = pneg %p1709_p3 }
  0x55   : > { %p1717_p13 = pnand %p1716_p11, %p1710_p4 }
  0x57   : > { %1720 = shalt.err (!%p1717_p13)
}
  0x58   : > { %1516 = dma.hbm_to_vmem [thread:$0]  (!%p1960_p12), %s2274_s4, 1024, %s222_s16, [#allocation6], %s1860_s27, %s1860_s27, %s1861_s28  }
  0x59   : > { %s237_s18 = sand.u32 1, %s1853_s23   ;;  %s1285_s26 = sshll.u32 %s1857_s24, 10 }
  0x5a   : > { %s1237_s5 = sshll.u32 %s237_s18, 6  ;;  %s2046_s13 = scalar_lea.hbm %s2272_s2, %s1285_s26 }
  0x5b   : > { %s239_s11 = scalar_lea.vmem [#allocation7], %s1237_s5  ;;  %s2050_s17 = scalar_lea.sflag [#allocation3], %s235_s29 }
  0x5c   : > { %s246_s15 = sshll.u32 %s239_s11, 4  ;;  %s1721_s19 = scalar_lea.hbm %s2046_s13, 1024  ;;  %s2048_s15 = int_to_ptr.vmem [resolvable:$true] %s246_s15 }
  0x5d   : > { %p1722_p12 = scmp.ne.s32.totalorder %s2046_s13, %s1721_s19  ;;  %p2293_p2 = scmp.ne.s32.totalorder %s2291_s12, 0 }
  0x5e   : > { %s1726_s20 = scalar_lea.hbm %s2272_s2, 2048  ;;  %p1727_p10 = scmp.lt.u32.totalorder %s2046_s13, %s2272_s2 }
  0x5f   : > { %p1723_p5 = pneg %p2293_p2  ;;  %p1728_p0 = scmp.lt.u32.totalorder %s1726_s20, %s1721_s19 }
  0x60   : > { %p1730_p3 = scmp.lt.u32.totalorder %s1721_s19, %s2046_s13 }
  0x61   : > { %p1724_p8 = pnand %p1723_p5, %p1722_p12  ;;  %p1729_p1 = por %p1728_p0, %p1727_p10 }
  0x63   : > { %p1725_p9 = pneg %p1724_p8  ;;  %p1731_p4 = por %p1730_p3, %p1729_p1 }
  0x65   : > { %p1732_p6 = pnand %p1731_p4, %p1725_p9 }
  0x67   : > { %1735 = shalt.err (!%p1732_p6)
}
  0x68   : > { %s1736_s29 = scalar_lea.vmem %s2048_s15, 1024  ;;  %s1864_s10 = smov [#allocation7]  }
  0x69   : > { %p1737_p7 = scmp.ne.s32.totalorder %s2048_s15, %s1736_s29  ;;  %s1741_s18 = sshll.u32 %s1864_s10, 4  ;;  %s1742_s18 = int_to_ptr.vmem [resolvable:$false] %s1741_s18 }
  0x6a   : > { %s1743_s5 = scalar_lea.vmem %s1742_s18, 2048  ;;  %p1744_p12 = scmp.lt.s32.totalorder %s2048_s15, %s1742_s18 }
  0x6b   : > { %p1739_p11 = pnand %p1737_p7, %p1723_p5  ;;  %p1745_p8 = scmp.lt.s32.totalorder %s1743_s5, %s1736_s29 }
  0x6d   : > { %p1740_p13 = pneg %p1739_p11  ;;  %p1746_p10 = por %p1745_p8, %p1744_p12 }
  0x6f   : > { %p1747_p0 = pnand %p1746_p10, %p1740_p13 }
  0x71   : > { %1750 = shalt.err (!%p1747_p0)
}
  0x72   : > { %1520 = dma.hbm_to_vmem [thread:$0]  (!%p2293_p2), %s2046_s13, 1024, %s2048_s15, %s2050_s17, %s1860_s27, %s1860_s27, %s1861_s28  }
  0x73   : > { %p2294_p5 = scmp.ne.s32.totalorder %s2289_s8, 0 }
  0x74   : > { %p2295_p9 = scmp.eq.s32.totalorder (!%p2294_p5), %s1923_s25, 0 }
  0x75   : > { %264 = sbr.rel (%p2294_p5) target bundleno = 1123 (0x463), region = 40 }
  0x7c   : > { %1820 = dma.done.wait (%p2295_p9), [#allocation3], 1024   ;;  %p2296_p1 = pmov %p2295_p9 }
  0x7e   : > { %1822 = vsyncadd (%p2296_p1), [#allocation3], 4294966272  ;;  %p2297_p3 = pmov %p2296_p1 }
  0x7f   : > { %p2298_p4 = pmov %p2296_p1 }
  0x80   : > { %1824 = dma.done.wait (%p2297_p3), [#allocation6], 1024  }
  0x81   : > { %1826 = vsyncadd (%p2298_p4), [#allocation6], 4294966272  ;;  %s274_s12 = sand.u32 1, %s1923_s25   ;;  %s276_s27 = sand.u32 1, %s1849_s22  }
  0x82   : > { %s1243_s28 = sshll.u32 %s276_s27, 6  ;;  %s275_s8 = scalar_lea.sflag [#allocation3], %s274_s12 }
  0x83   : > { %s2093_s26 = scalar_lea.vmem [#allocation7], %s1243_s28  ;;  %p2299_p2 = scmp.ne.s32.totalorder %s2288_s7, 0 }
  0x85   : > { %1828 = dma.done.wait (%p2299_p2), %s275_s8, 1024  }
  0x86   : > { %1830 = vsyncadd (%p2299_p2), %s275_s8, 4294966272  ;;  %p2300_p6 = pmov %p2296_p1 }
  0x87   : > { %p2301_p7 = pmov %p2296_p1 }
  0x88   : > { %1832 = dma.done.wait (%p2300_p6), [#allocation6], 1024  }
  0x89   : > { %1834 = vsyncadd (%p2301_p7), [#allocation6], 4294966272  ;;  %p309_p11 = scmp.lt.s32.totalorder %s1923_s25, 1  ;;  %p2302_p13 = scmp.ne.s32.totalorder %s1923_s25, 0 }
  0x8a   : > { %v1287_v0 = vld [vmem:[#allocation5] sm:$0xff] (!%p2302_p13)   ;;  %v1318_v1 = vld [vmem:[#allocation5 + $0x8] sm:$0xff] (!%p2302_p13)   ;;  %v1319_v2 = vld [vmem:[#allocation5 + $0x10] sm:$0xff] (!%p2302_p13)  }
  0x8b   : > { %s2105_s30 = scalar_select %p309_p11, %s1923_s25, 1 }
  0x8c   : > { %316 = sbr.rel (%p2302_p13) target bundleno = 575 (0x23f), region = 60  ;;  %v1288_v3 = vunpack.c.l.bf16 (!%p2302_p13), %v1287_v0  ;;  %v1289_v4 = vunpack.c.h.bf16 (!%p2302_p13), %v1287_v0  ;;  %v1292_v5 = vunpack.c.l.bf16 (!%p2302_p13), %v1318_v1  ;;  %v1293_v6 = vunpack.c.h.bf16 (!%p2302_p13), %v1318_v1  ;;  %v1320_v7 = vld [vmem:[#allocation5 + $0x18] sm:$0xff] (!%p2302_p13)   ;;  %v1321_v8 = vld [vmem:[#allocation5 + $0x20] sm:$0xff] (!%p2302_p13)   ;;  %v1322_v9 = vld [vmem:[#allocation5 + $0x28] sm:$0xff] (!%p2302_p13)  }
  0x8d   : > { %s311_s11 = scalar_lea.vmem %s2273_s3, %s2105_s30  ;;  %v1296_v10 = vunpack.c.l.bf16 (!%p2302_p13), %v1319_v2  ;;  %v1297_v11 = vunpack.c.h.bf16 (!%p2302_p13), %v1319_v2  ;;  %v1300_v12 = vunpack.c.l.bf16 (!%p2302_p13), %v1320_v7  ;;  %v1301_v13 = vunpack.c.h.bf16 (!%p2302_p13), %v1320_v7  ;;  %v1323_v14 = vld [vmem:[#allocation5 + $0x30] sm:$0xff] (!%p2302_p13)   ;;  %v1324_v15 = vld [vmem:[#allocation5 + $0x38] sm:$0xff] (!%p2302_p13)   ;;  %v1573_v20 = vld [vmem:[#allocation8] sm:$0xff] (!%p2302_p13)  }
  0x8e   : > { %v1304_v16 = vunpack.c.l.bf16 (!%p2302_p13), %v1321_v8  ;;  %v1305_v17 = vunpack.c.h.bf16 (!%p2302_p13), %v1321_v8  ;;  %v1308_v18 = vunpack.c.l.bf16 (!%p2302_p13), %v1322_v9  ;;  %v1309_v19 = vunpack.c.h.bf16 (!%p2302_p13), %v1322_v9  ;;  %349 = vst [vmem:[#allocation9] sm:$0xff] (!%p2302_p13), %v1288_v3  ;;  %350 = vst [vmem:[#allocation9 + $0x8] sm:$0xff] (!%p2302_p13), %v1289_v4  ;;  %v1574_v25 = vld [vmem:[#allocation8 + $0x8] sm:$0xff] (!%p2302_p13)   ;;  %1373 = vmatprep.subr.bf16.mxu0 (!%p2302_p13), %v1573_v20  ;;  %1469 = vmatprep.subr.bf16.mxu1 (!%p2302_p13), %v1573_v20  ;;  %v1575_v26 = vld [vmem:[#allocation8 + $0x10] sm:$0xff] (!%p2302_p13)  }
  0x8f   : > { %351 = vst [vmem:[#allocation9 + $0x10] sm:$0xff] (!%p2302_p13), %v1292_v5  ;;  %352 = vst [vmem:[#allocation9 + $0x18] sm:$0xff] (!%p2302_p13), %v1293_v6  ;;  %v1312_v21 = vunpack.c.l.bf16 (!%p2302_p13), %v1323_v14  ;;  %v1313_v22 = vunpack.c.h.bf16 (!%p2302_p13), %v1323_v14  ;;  %v1316_v23 = vunpack.c.l.bf16 (!%p2302_p13), %v1324_v15  ;;  %v1317_v24 = vunpack.c.h.bf16 (!%p2302_p13), %v1324_v15  ;;  %1374 = vmatpush3.bf16.msra.mxu0 (!%p2302_p13), %v1573_v20  ;;  %1477 = vmatpush3.bf16.msra.mxu1 (!%p2302_p13), %v1573_v20  ;;  %v1576_v27 = vld [vmem:[#allocation8 + $0x18] sm:$0xff] (!%p2302_p13)   ;;  %v1581_v28 = vld [vmem:[#allocation5] sm:$0xff] (!%p2302_p13)  }
  0x90   : > { %353 = vst [vmem:[#allocation9 + $0x20] sm:$0xff] (!%p2302_p13), %v1296_v10  ;;  %354 = vst [vmem:[#allocation9 + $0x28] sm:$0xff] (!%p2302_p13), %v1297_v11  ;;  %1375 = vmatprep.subr.bf16.mxu0 (!%p2302_p13), %v1574_v25  ;;  %1470 = vmatprep.subr.bf16.mxu1 (!%p2302_p13), %v1574_v25  ;;  %v1582_v29 = vld [vmem:[#allocation5 + $0x20] sm:$0xff] (!%p2302_p13)   ;;  %v1578_v31 = vld [vmem:[#allocation8 + $0x28] sm:$0xff] (!%p2302_p13)  }
  0x91   : > { %355 = vst [vmem:[#allocation9 + $0x30] sm:$0xff] (!%p2302_p13), %v1300_v12  ;;  %356 = vst [vmem:[#allocation9 + $0x38] sm:$0xff] (!%p2302_p13), %v1301_v13  ;;  %1389 = vmatprep.mubr.bf16.mxu0 (!%p2302_p13), %v1581_v28  ;;  %v1577_v30 = vld [vmem:[#allocation8 + $0x20] sm:$0xff] (!%p2302_p13)   ;;  %1397 = vmatprep.mubr.bf16.mxu1 (!%p2302_p13), %v1582_v29  ;;  %v1579_v32 = vld [vmem:[#allocation8 + $0x30] sm:$0xff] (!%p2302_p13)  }
  0x92   : > { %357 = vst [vmem:[#allocation9 + $0x40] sm:$0xff] (!%p2302_p13), %v1304_v16  ;;  %358 = vst [vmem:[#allocation9 + $0x48] sm:$0xff] (!%p2302_p13), %v1305_v17  ;;  %v1580_v33 = vld [vmem:[#allocation8 + $0x38] sm:$0xff] (!%p2302_p13)   ;;  %v1583_v34 = vld [vmem:[#allocation5 + $0x8] sm:$0xff] (!%p2302_p13)  }
  0x93   : > { %359 = vst [vmem:[#allocation9 + $0x50] sm:$0xff] %v1308_v18  ;;  %360 = vst [vmem:[#allocation9 + $0x58] sm:$0xff] %v1309_v19  ;;  %1376 = vmatpush3.bf16.msra.mxu0 %v1574_v25  ;;  %1478 = vmatpush3.bf16.msra.mxu1 %v1574_v25  ;;  %v1584_v35 = vld [vmem:[#allocation5 + $0x28] sm:$0xff]   ;;  %v1585_v36 = vld [vmem:[#allocation5 + $0x10] sm:$0xff]  }
  0x94   : > { %361 = vst [vmem:[#allocation9 + $0x60] sm:$0xff] %v1312_v21  ;;  %362 = vst [vmem:[#allocation9 + $0x68] sm:$0xff] %v1313_v22  ;;  %1377 = vmatprep.subr.bf16.mxu0 %v1575_v26  ;;  %1471 = vmatprep.subr.bf16.mxu1 %v1575_v26  ;;  %v1587_v37 = vld [vmem:[#allocation5 + $0x30] sm:$0xff]   ;;  %v1586_v38 = vld [vmem:[#allocation5 + $0x18] sm:$0xff]  }
  0x95   : > { %363 = vst [vmem:[#allocation9 + $0x70] sm:$0xff] %v1316_v23  ;;  %364 = vst [vmem:[#allocation9 + $0x78] sm:$0xff] %v1317_v24  ;;  %v1588_v39 = vld [vmem:[#allocation5 + $0x38] sm:$0xff]  }
  0x97   : > { %1378 = vmatpush3.bf16.msra.mxu0 %v1575_v26  ;;  %1479 = vmatpush3.bf16.msra.mxu1 %v1575_v26 }
  0x98   : > { %1379 = vmatprep.subr.bf16.mxu0 %v1576_v27  ;;  %1472 = vmatprep.subr.bf16.mxu1 %v1576_v27 }
  0x9b   : > { %1380 = vmatpush3.bf16.msra.mxu0 %v1576_v27  ;;  %1480 = vmatpush3.bf16.msra.mxu1 %v1576_v27 }
  0x9c   : > { %1381 = vmatprep.subr.bf16.mxu0 %v1577_v30  ;;  %1473 = vmatprep.subr.bf16.mxu1 %v1577_v30 }
  0x9f   : > { %1382 = vmatpush3.bf16.msra.mxu0 %v1577_v30  ;;  %1481 = vmatpush3.bf16.msra.mxu1 %v1577_v30 }
  0xa0   : > { %1383 = vmatprep.subr.bf16.mxu0 %v1578_v31  ;;  %1474 = vmatprep.subr.bf16.mxu1 %v1578_v31 }
  0xa3   : > { %1384 = vmatpush3.bf16.msra.mxu0 %v1578_v31  ;;  %1482 = vmatpush3.bf16.msra.mxu1 %v1578_v31 }
  0xa4   : > { %1385 = vmatprep.subr.bf16.mxu0 %v1579_v32  ;;  %1475 = vmatprep.subr.bf16.mxu1 %v1579_v32 }
  0xa7   : > { %1386 = vmatpush3.bf16.msra.mxu0 %v1579_v32  ;;  %1483 = vmatpush3.bf16.msra.mxu1 %v1579_v32 }
  0xa8   : > { %1387 = vmatprep.subr.bf16.mxu0 %v1580_v33  ;;  %1476 = vmatprep.subr.bf16.mxu1 %v1580_v33 }
  0xab   : > { %1388 = vmatpush3.bf16.msra.mxu0 %v1580_v33  ;;  %1484 = vmatpush3.bf16.msra.mxu1 %v1580_v33 }
  0xae   : > { %1390 = vmatmul.mubr.bf16.vlgmr.msra.gmra.mrb[0].mxu0 %v1583_v34  ;;  %1398 = vmatmul.mubr.bf16.vlgmr.msra.gmra.mrb[0].mxu1 %v1584_v35 }
  0xaf   : > { %1393 = vmatprep.mubr.bf16.mxu0 %v1585_v36  ;;  %1401 = vmatprep.mubr.bf16.mxu1 %v1587_v37 }
  0xb6   : > { %1394 = vmatmul.mubr.bf16.gmra.mrb[4].mxu0 %v1586_v38  ;;  %1402 = vmatmul.mubr.bf16.gmra.mrb[4].mxu1 %v1588_v39 }
 0x181   : > { %v2113_v40 = vpop.f32.mrb[0].mxu0  ;;  %v2115_v41 = vpop.f32.mrb[0].mxu1 }
 0x182   : > { %v2117_v42 = vpop.f32.mrb[1].mxu0  ;;  %v2119_v43 = vpop.f32.mrb[1].mxu1  ;;  %v600_v44 = vmul.f32 %v2115_v41, %v2115_v41  ;;  %v592_v45 = vmul.f32 %v2113_v40, %v2113_v40 }
 0x183   : > { %v2125_v46 = vpop.f32.mrb[2].mxu0  ;;  %v2127_v47 = vpop.f32.mrb[2].mxu1  ;;  %v590_v50 = vmul.f32 %v2117_v42, %v2117_v42  ;;  %v598_v54 = vmul.f32 %v2119_v43, %v2119_v43 }
 0x184   : > { %626 = vadd.xlane.f32.xlu0 %v600_v44  ;;  %v2129_v48 = vpop.f32.mrb[3].mxu1  ;;  %610 = vadd.xlane.f32.xlu1 %v592_v45  ;;  %v2131_v49 = vpop.f32.mrb[3].mxu0  ;;  %v593_v51 = vmul.f32 %v2125_v46, %v2125_v46  ;;  %v601_v55 = vmul.f32 %v2127_v47, %v2127_v47 }
 0x185   : > { %v599_v62 = vmul.f32 %v2129_v48, %v2129_v48  ;;  %v591_v63 = vmul.f32 %v2131_v49, %v2131_v49 }
 0x188   : > { %606 = vadd.xlane.f32.xlu0 %v590_v50  ;;  %612 = vadd.xlane.f32.xlu1 %v593_v51 }
 0x189   : > { %v2137_v52 = vpop.f32.mrb[4].mxu0  ;;  %v2139_v53 = vpop.f32.mrb[4].mxu1 }
 0x18a   : > { %v2145_v56 = vpop.f32.mrb[5].mxu0  ;;  %v2147_v57 = vpop.f32.mrb[5].mxu1  ;;  %v596_v0 = vmul.f32 %v2137_v52, %v2137_v52  ;;  %v604_v6 = vmul.f32 %v2139_v53, %v2139_v53 }
 0x18b   : > { %v2149_v58 = vpop.f32.mrb[6].mxu0  ;;  %v2151_v59 = vpop.f32.mrb[6].mxu1  ;;  %v594_v3 = vmul.f32 %v2145_v56, %v2145_v56  ;;  %v602_v5 = vmul.f32 %v2147_v57, %v2147_v57 }
 0x18c   : > { %622 = vadd.xlane.f32.xlu0 %v598_v54  ;;  %628 = vadd.xlane.f32.xlu1 %v601_v55  ;;  %v2153_v60 = vpop.f32.mrb[7].mxu0  ;;  %v2155_v61 = vpop.f32.mrb[7].mxu1  ;;  %v597_v1 = vmul.f32 %v2149_v58, %v2149_v58  ;;  %v605_v7 = vmul.f32 %v2151_v59, %v2151_v59 }
 0x18d   : > { %v595_v2 = vmul.f32 %v2153_v60, %v2153_v60  ;;  %v603_v4 = vmul.f32 %v2155_v61, %v2155_v61 }
 0x190   : > { %624 = vadd.xlane.f32.xlu1 %v599_v62  ;;  %608 = vadd.xlane.f32.xlu0 %v591_v63 }
 0x194   : > { %618 = vadd.xlane.f32.xlu0 %v596_v0  ;;  %620 = vadd.xlane.f32.xlu1 %v597_v1 }
 0x198   : > { %614 = vadd.xlane.f32.xlu0 %v594_v3  ;;  %616 = vadd.xlane.f32.xlu1 %v595_v2 }
 0x19c   : > { %630 = vadd.xlane.f32.xlu0 %v602_v5  ;;  %632 = vadd.xlane.f32.xlu1 %v603_v4 }
 0x1a0   : > { %634 = vadd.xlane.f32.xlu0 %v604_v6  ;;  %636 = vadd.xlane.f32.xlu1 %v605_v7 }
 0x211   : > { %v627_v8 = vpop.xlane.xlu0 %626  ;;  %v611_v9 = vpop.xlane.xlu1 %610 }
 0x212   : > { %1589 = vrsqrt.f32 %v627_v8  ;;  %vm648_vm0 = vcmp.gt.f32.partialorder %v627_v8, 1.0  ;;  %vm640_vm1 = vcmp.gt.f32.partialorder %v611_v9, 1.0 }
 0x213   : > { %1591 = vrsqrt.f32 %v611_v9 }
 0x215   : > { %v607_v10 = vpop.xlane.xlu0 %606  ;;  %v613_v11 = vpop.xlane.xlu1 %612 }
 0x216   : > { %1593 = vrsqrt.f32 %v607_v10  ;;  %vm638_vm2 = vcmp.gt.f32.partialorder %v607_v10, 1.0  ;;  %vm641_vm3 = vcmp.gt.f32.partialorder %v613_v11, 1.0 }
 0x217   : > { %1595 = vrsqrt.f32 %v613_v11 }
 0x219   : > { %v623_v12 = vpop.xlane.xlu0 %622  ;;  %v629_v13 = vpop.xlane.xlu1 %628 }
 0x21a   : > { %1597 = vrsqrt.f32 %v623_v12  ;;  %vm646_vm4 = vcmp.gt.f32.partialorder %v623_v12, 1.0  ;;  %vm649_vm5 = vcmp.gt.f32.partialorder %v629_v13, 1.0 }
 0x21b   : > { %1599 = vrsqrt.f32 %v629_v13 }
 0x21c   : > { %v1590_v14 = vpop.eup %1589 }
 0x21d   : > { %v1592_v15 = vpop.eup %1591  ;;  %v680_v16 = vsel %vm648_vm0, %v1590_v14, 1.0  ;;  %v625_v17 = vpop.xlane.xlu1 %624 }
 0x21e   : > { %v609_v18 = vpop.xlane.xlu0 %608  ;;  %v696_v19 = vmul.f32 %v2115_v41, %v680_v16  ;;  %v672_v20 = vsel %vm640_vm1, %v1592_v15, 1.0  ;;  %1601 = vrsqrt.f32 %v625_v17  ;;  %vm647_vm6 = vcmp.gt.f32.partialorder %v625_v17, 1.0 }
 0x21f   : > { %v688_v21 = vmul.f32 %v2113_v40, %v672_v20  ;;  %1603 = vrsqrt.f32 %v609_v18  ;;  %vm639_vm7 = vcmp.gt.f32.partialorder %v609_v18, 1.0 }
 0x220   : > { %v1594_v22 = vpop.eup %1593  ;;  %712 = vst [vmem:[#allocation10 + $0x50] sm:$0xff] %v696_v19 }
 0x221   : > { %v1596_v23 = vpop.eup %1595  ;;  %704 = vst [vmem:[#allocation10 + $0x10] sm:$0xff] %v688_v21  ;;  %v670_v24 = vsel %vm638_vm2, %v1594_v22, 1.0  ;;  %v621_v26 = vpop.xlane.xlu1 %620 }
 0x222   : > { %v619_v25 = vpop.xlane.xlu0 %618  ;;  %v686_v27 = vmul.f32 %v670_v24, %v2117_v42  ;;  %v673_v28 = vsel %vm641_vm3, %v1596_v23, 1.0  ;;  %vm645_vm9 = vcmp.gt.f32.partialorder %v621_v26, 1.0 }
 0x223   : > { %1605 = vrsqrt.f32 %v619_v25  ;;  %v689_v29 = vmul.f32 %v2125_v46, %v673_v28  ;;  %vm644_vm8 = vcmp.gt.f32.partialorder %v619_v25, 1.0 }
 0x224   : > { %1607 = vrsqrt.f32 %v621_v26  ;;  %v1598_v30 = vpop.eup %1597  ;;  %702 = vst [vmem:[#allocation10] sm:$0xff] %v686_v27 }
 0x225   : > { %v1600_v31 = vpop.eup %1599  ;;  %705 = vst [vmem:[#allocation10 + $0x18] sm:$0xff] %v689_v29  ;;  %v678_v32 = vsel %vm646_vm4, %v1598_v30, 1.0  ;;  %v617_v34 = vpop.xlane.xlu1 %616 }
 0x226   : > { %v615_v33 = vpop.xlane.xlu0 %614  ;;  %v694_v35 = vmul.f32 %v678_v32, %v2119_v43  ;;  %v681_v36 = vsel %vm649_vm5, %v1600_v31, 1.0  ;;  %vm643_vm11 = vcmp.gt.f32.partialorder %v617_v34, 1.0 }
 0x227   : > { %1609 = vrsqrt.f32 %v615_v33  ;;  %v697_v37 = vmul.f32 %v2127_v47, %v681_v36  ;;  %vm642_vm10 = vcmp.gt.f32.partialorder %v615_v33, 1.0 }
 0x228   : > { %1611 = vrsqrt.f32 %v617_v34  ;;  %v1602_v38 = vpop.eup %1601  ;;  %710 = vst [vmem:[#allocation10 + $0x40] sm:$0xff] %v694_v35 }
 0x229   : > { %v1604_v39 = vpop.eup %1603  ;;  %713 = vst [vmem:[#allocation10 + $0x58] sm:$0xff] %v697_v37  ;;  %v679_v40 = vsel %vm647_vm6, %v1602_v38, 1.0  ;;  %v633_v42 = vpop.xlane.xlu1 %632 }
 0x22a   : > { %v631_v41 = vpop.xlane.xlu0 %630  ;;  %v695_v44 = vmul.f32 %v679_v40, %v2129_v48  ;;  %v671_v45 = vsel %vm639_vm7, %v1604_v39, 1.0  ;;  %vm651_vm13 = vcmp.gt.f32.partialorder %v633_v42, 1.0 }
 0x22b   : > { %1613 = vrsqrt.f32 %v631_v41  ;;  %v687_v43 = vmul.f32 %v671_v45, %v2131_v49  ;;  %vm650_vm12 = vcmp.gt.f32.partialorder %v631_v41, 1.0 }
 0x22c   : > { %1615 = vrsqrt.f32 %v633_v42  ;;  %711 = vst [vmem:[#allocation10 + $0x48] sm:$0xff] %v695_v44 }
 0x22d   : > { %v1606_v46 = vpop.eup %1605  ;;  %703 = vst [vmem:[#allocation10 + $0x8] sm:$0xff] %v687_v43  ;;  %v637_v54 = vpop.xlane.xlu1 %636 }
 0x22e   : > { %v1608_v47 = vpop.eup %1607  ;;  %v676_v50 = vsel %vm644_vm8, %v1606_v46, 1.0  ;;  %v635_v51 = vpop.xlane.xlu0 %634  ;;  %vm653_vm15 = vcmp.gt.f32.partialorder %v637_v54, 1.0 }
 0x22f   : > { %v692_v55 = vmul.f32 %v2137_v52, %v676_v50  ;;  %v677_v62 = vsel %vm645_vm9, %v1608_v47, 1.0  ;;  %1617 = vrsqrt.f32 %v635_v51  ;;  %vm652_vm14 = vcmp.gt.f32.partialorder %v635_v51, 1.0 }
 0x230   : > { %v693_v48 = vmul.f32 %v2149_v58, %v677_v62  ;;  %1619 = vrsqrt.f32 %v637_v54 }
 0x231   : > { %v1610_v63 = vpop.eup %1609  ;;  %708 = vst [vmem:[#allocation10 + $0x30] sm:$0xff] %v692_v55 }
 0x232   : > { %v1612_v49 = vpop.eup %1611  ;;  %709 = vst [vmem:[#allocation10 + $0x38] sm:$0xff] %v693_v48  ;;  %v674_v0 = vsel %vm642_vm10, %v1610_v63, 1.0 }
 0x233   : > { %v690_v1 = vmul.f32 %v674_v0, %v2145_v56  ;;  %v675_v2 = vsel %vm643_vm11, %v1612_v49, 1.0 }
 0x234   : > { %v691_v3 = vmul.f32 %v675_v2, %v2153_v60 }
 0x235   : > { %v1614_v4 = vpop.eup %1613  ;;  %706 = vst [vmem:[#allocation10 + $0x20] sm:$0xff] %v690_v1 }
 0x236   : > { %v1616_v52 = vpop.eup %1615  ;;  %707 = vst [vmem:[#allocation10 + $0x28] sm:$0xff] %v691_v3  ;;  %v682_v5 = vsel %vm650_vm12, %v1614_v4, 1.0 }
 0x237   : > { %v698_v58 = vmul.f32 %v682_v5, %v2147_v57  ;;  %v683_v6 = vsel %vm651_vm13, %v1616_v52, 1.0 }
 0x238   : > { %v699_v7 = vmul.f32 %v683_v6, %v2155_v61 }
 0x239   : > { %v1618_v8 = vpop.eup %1617  ;;  %714 = vst [vmem:[#allocation10 + $0x60] sm:$0xff] %v698_v58 }
 0x23a   : > { %v1620_v9 = vpop.eup %1619  ;;  %715 = vst [vmem:[#allocation10 + $0x68] sm:$0xff] %v699_v7  ;;  %v684_v56 = vsel %vm652_vm14, %v1618_v8, 1.0 }
 0x23b   : > { %v700_v60 = vmul.f32 %v2139_v53, %v684_v56  ;;  %v685_v10 = vsel %vm653_vm15, %v1620_v9, 1.0 }
 0x23c   : > { %v701_v11 = vmul.f32 %v2151_v59, %v685_v10 }
 0x23d   : > { %716 = vst [vmem:[#allocation10 + $0x70] sm:$0xff] %v700_v60 }
 0x23e   : > { %717 = vst [vmem:[#allocation10 + $0x78] sm:$0xff] %v701_v11 }
 0x23f PF: > { %v1621_v57 = vld [vmem:[%s2093_s26] sm:$0xff]   ;;  %v1622_v61 = vld [vmem:[%s2093_s26 + $0x8] sm:$0xff]   ;;  %v1623_v12 = vld [vmem:[%s2093_s26 + $0x10] sm:$0xff]   ;;  %p1528_p12 = scmp.eq.s32.totalorder %s1923_s25, 1  ;;  %s1865_s7 = smov [#allocation10]  }
 0x240   : > { %1405 = vmatprep.subr.bf16.mxu0 %v1621_v57  ;;  %v1624_v53 = vld [vmem:[%s2093_s26 + $0x18] sm:$0xff]   ;;  %v1625_v15 = vld [vmem:[%s2093_s26 + $0x20] sm:$0xff]   ;;  %v1626_v16 = vld [vmem:[%s2093_s26 + $0x28] sm:$0xff]   ;;  %s1130_s15 = sshll.u32 %s1865_s7, 4  ;;  %s1131_s15 = int_to_ptr.vmem [resolvable:$true] %s1130_s15 }
 0x241   : > { %1406 = vmatpush3.bf16.msra.mxu0 %v1621_v57  ;;  %v718_v59 = vld [vmem:[#allocation9] sm:$0xff]  ;;  %v719_v13 = vld [vmem:[#allocation9 + $0x8] sm:$0xff]  ;;  %v1627_v17 = vld [vmem:[%s2093_s26 + $0x30] sm:$0xff]   ;;  %s1751_s17 = scalar_lea.vmem %s1131_s15, 2048  ;;  %p1758_p5 = scmp.lt.s32.totalorder %s1131_s15, %s1131_s15 }
 0x242   : > { %1407 = vmatprep.subr.bf16.mxu0 %v1622_v61  ;;  %v734_v14 = vpack.c.bf16 %v719_v13, %v718_v59  ;;  %v1628_v18 = vld [vmem:[%s2093_s26 + $0x38] sm:$0xff]   ;;  %v720_v19 = vld [vmem:[#allocation9 + $0x10] sm:$0xff]  ;;  %v730_v33 = vld [vmem:[#allocation9 + $0x60] sm:$0xff]  ;;  %p1752_p8 = scmp.ne.s32.totalorder %s1131_s15, %s1751_s17  ;;  %p1759_p9 = scmp.lt.s32.totalorder %s1751_s17, %s1751_s17 }
 0x243   : > { %v721_v20 = vld [vmem:[#allocation9 + $0x18] sm:$0xff]  ;;  %v722_v21 = vld [vmem:[#allocation9 + $0x20] sm:$0xff]  ;;  %v723_v22 = vld [vmem:[#allocation9 + $0x28] sm:$0xff] }
 0x244   : > { %1421 = vmatprep.mubr.bf16.mxu0 %v734_v14  ;;  %v735_v23 = vpack.c.bf16 %v721_v20, %v720_v19  ;;  %v736_v24 = vpack.c.bf16 %v723_v22, %v722_v21  ;;  %v724_v25 = vld [vmem:[#allocation9 + $0x30] sm:$0xff]  ;;  %v725_v26 = vld [vmem:[#allocation9 + $0x38] sm:$0xff]  ;;  %v731_v34 = vld [vmem:[#allocation9 + $0x68] sm:$0xff]  ;;  %p1753_p10 = pnand %p1752_p8, %p1528_p12  ;;  %p1760_p1 = por %p1759_p9, %p1758_p5 }
 0x245   : > { %1408 = vmatpush3.bf16.msra.mxu0 %v1622_v61  ;;  %v726_v27 = vld [vmem:[#allocation9 + $0x40] sm:$0xff]  ;;  %v727_v28 = vld [vmem:[#allocation9 + $0x48] sm:$0xff]  ;;  %v737_v29 = vpack.c.bf16 %v725_v26, %v724_v25  ;;  %v728_v31 = vld [vmem:[#allocation9 + $0x50] sm:$0xff]  ;;  %v740_v36 = vpack.c.bf16 %v731_v34, %v730_v33 }
 0x246   : > { %1409 = vmatprep.subr.bf16.mxu0 %v1623_v12  ;;  %v738_v30 = vpack.c.bf16 %v727_v28, %v726_v27  ;;  %v729_v32 = vld [vmem:[#allocation9 + $0x58] sm:$0xff]  ;;  %v732_v37 = vld [vmem:[#allocation9 + $0x70] sm:$0xff]  ;;  %v1629_v40 = vld [vmem:[#allocation2] sm:$0xff]   ;;  %p1754_p0 = pneg %p1753_p10 }
 0x247   : > { %v739_v35 = vpack.c.bf16 %v729_v32, %v728_v31  ;;  %v733_v38 = vld [vmem:[#allocation9 + $0x78] sm:$0xff]  ;;  %1453 = vmatprep.mubr.bf16.mxu1 %v1629_v40  ;;  %v1630_v7 = vld [vmem:[#allocation2 + $0x8] sm:$0xff]   ;;  %v1631_v8 = vld [vmem:[#allocation2 + $0x10] sm:$0xff]  }
 0x248   : > { %v741_v39 = vpack.c.bf16 %v733_v38, %v732_v37  ;;  %v1632_v9 = vld [vmem:[#allocation2 + $0x18] sm:$0xff]   ;;  %v1633_v56 = vld [vmem:[#allocation2 + $0x20] sm:$0xff]   ;;  %v1634_v60 = vld [vmem:[#allocation2 + $0x28] sm:$0xff]   ;;  %p1761_p3 = pnand %p1760_p1, %p1754_p0 }
 0x249   : > { %1410 = vmatpush3.bf16.msra.mxu0 %v1623_v12  ;;  %v1635_v10 = vld [vmem:[#allocation2 + $0x30] sm:$0xff]   ;;  %v1636_v11 = vld [vmem:[#allocation2 + $0x38] sm:$0xff]  }
 0x24a   : > { %1411 = vmatprep.subr.bf16.mxu0 %v1624_v53 }
 0x24d   : > { %1412 = vmatpush3.bf16.msra.mxu0 %v1624_v53 }
 0x24e   : > { %1413 = vmatprep.subr.bf16.mxu0 %v1625_v15 }
 0x251   : > { %1414 = vmatpush3.bf16.msra.mxu0 %v1625_v15 }
 0x252   : > { %1415 = vmatprep.subr.bf16.mxu0 %v1626_v16 }
 0x255   : > { %1416 = vmatpush3.bf16.msra.mxu0 %v1626_v16 }
 0x256   : > { %1417 = vmatprep.subr.bf16.mxu0 %v1627_v17 }
 0x259   : > { %1418 = vmatpush3.bf16.msra.mxu0 %v1627_v17 }
 0x25a   : > { %1419 = vmatprep.subr.bf16.mxu0 %v1628_v18 }
 0x25d   : > { %1420 = vmatpush3.bf16.msra.mxu0 %v1628_v18 }
 0x260   : > { %1422 = vmatmul.mubr.bf16.vlgmr.msra.gmra.mrb[0].mxu0 %v735_v23 }
 0x261   : > { %1425 = vmatprep.mubr.bf16.mxu0 %v736_v24 }
 0x268   : > { %1426 = vmatmul.mubr.bf16.gmra.mrb[4].mxu0 %v737_v29 }
 0x269   : > { %1429 = vmatprep.mubr.bf16.mxu0 %v738_v30 }
 0x270   : > { %1430 = vmatmul.mubr.bf16.gmra.mrb[8].mxu0 %v739_v35 }
 0x271   : > { %1433 = vmatprep.mubr.bf16.mxu0 %v740_v36 }
 0x278   : > { %1434 = vmatmul.mubr.bf16.gmra.mrb[12].mxu0 %v741_v39 }
 0x333   : > { %v1423_v41 = vpop.f32.mrb[0].mxu0 }
 0x334   : > { %v840_v42 = vpop.f32.mrb[1].mxu0 }
 0x335   : > { %v1424_v44 = vpop.f32.mrb[2].mxu0 }
 0x336   : > { %v920_v45 = vpack.c.bf16 %v1424_v44, %v1423_v41  ;;  %v843_v43 = vpop.f32.mrb[3].mxu0 }
 0x337   : > { %v919_v46 = vpack.c.bf16 %v843_v43, %v840_v42 }
 0x339   : > { %1437 = vmatprep.subr.bf16.mxu1 %v919_v46 }
 0x33a   : > { %1438 = vmatpush3.bf16.msra.mxu1 %v919_v46 }
 0x33b   : > { %v1427_v47 = vpop.f32.mrb[4].mxu0  ;;  %1439 = vmatprep.subr.bf16.mxu1 %v920_v45 }
 0x33c   : > { %v856_v50 = vpop.f32.mrb[5].mxu0 }
 0x33d   : > { %v1428_v51 = vpop.f32.mrb[6].mxu0 }
 0x33e   : > { %v922_v54 = vpack.c.bf16 %v1428_v51, %v1427_v47  ;;  %v859_v55 = vpop.f32.mrb[7].mxu0  ;;  %1440 = vmatpush3.bf16.msra.mxu1 %v920_v45 }
 0x33f   : > { %v921_v62 = vpack.c.bf16 %v859_v55, %v856_v50 }
 0x341   : > { %1441 = vmatprep.subr.bf16.mxu1 %v921_v62 }
 0x342   : > { %1442 = vmatpush3.bf16.msra.mxu1 %v921_v62 }
 0x343   : > { %v1431_v48 = vpop.f32.mrb[8].mxu0  ;;  %1443 = vmatprep.subr.bf16.mxu1 %v922_v54 }
 0x344   : > { %v872_v63 = vpop.f32.mrb[9].mxu0 }
 0x345   : > { %v1432_v49 = vpop.f32.mrb[10].mxu0 }
 0x346   : > { %v924_v0 = vpack.c.bf16 %v1432_v49, %v1431_v48  ;;  %v875_v1 = vpop.f32.mrb[11].mxu0  ;;  %1444 = vmatpush3.bf16.msra.mxu1 %v922_v54 }
 0x347   : > { %v923_v2 = vpack.c.bf16 %v875_v1, %v872_v63 }
 0x349   : > { %1445 = vmatprep.subr.bf16.mxu1 %v923_v2 }
 0x34a   : > { %1446 = vmatpush3.bf16.msra.mxu1 %v923_v2 }
 0x34b   : > { %v1435_v3 = vpop.f32.mrb[12].mxu0  ;;  %1447 = vmatprep.subr.bf16.mxu1 %v924_v0 }
 0x34c   : > { %v888_v4 = vpop.f32.mrb[13].mxu0 }
 0x34d   : > { %v1436_v52 = vpop.f32.mrb[14].mxu0 }
 0x34e   : > { %v926_v5 = vpack.c.bf16 %v1436_v52, %v1435_v3  ;;  %v891_v58 = vpop.f32.mrb[15].mxu0  ;;  %1448 = vmatpush3.bf16.msra.mxu1 %v924_v0 }
 0x34f   : > { %v925_v6 = vpack.c.bf16 %v891_v58, %v888_v4 }
 0x351   : > { %1449 = vmatprep.subr.bf16.mxu1 %v925_v6 }
 0x352   : > { %1450 = vmatpush3.bf16.msra.mxu1 %v925_v6 }
 0x353   : > { %1451 = vmatprep.subr.bf16.mxu1 %v926_v5 }
 0x356   : > { %1452 = vmatpush3.bf16.msra.mxu1 %v926_v5 }
 0x359   : > { %1454 = vmatmul.mubr.bf16.vlgmr.msra.gmra.mrb[0].mxu1 %v1630_v7 }
 0x35a   : > { %1457 = vmatprep.mubr.bf16.mxu1 %v1631_v8 }
 0x361   : > { %1458 = vmatmul.mubr.bf16.gmra.mrb[4].mxu1 %v1632_v9 }
 0x362   : > { %1461 = vmatprep.mubr.bf16.mxu1 %v1633_v56 }
 0x369   : > { %1462 = vmatmul.mubr.bf16.gmra.mrb[8].mxu1 %v1634_v60 }
 0x36a   : > { %1465 = vmatprep.mubr.bf16.mxu1 %v1635_v10 }
 0x371   : > { %1466 = vmatmul.mubr.bf16.gmra.mrb[12].mxu1 %v1636_v11 }
 0x372   : > { %1764 = shalt.err (!%p1761_p3)
}
 0x373   : > { %s1765_s16 = scalar_lea.hbm %s2276_s6, 2048 }
 0x374   : > { %p1766_p4 = scmp.ne.s32.totalorder %s2276_s6, %s1765_s16  ;;  %p1771_p7 = scmp.lt.u32.totalorder %s1765_s16, %s2276_s6 }
 0x376   : > { %p1767_p2 = pnand %p1766_p4, %p1528_p12 }
 0x378   : > { %p1768_p6 = pneg %p1767_p2 }
 0x37a   : > { %p1773_p11 = pnand %p1771_p7, %p1768_p6 }
 0x37c   : > { %1776 = shalt.err (!%p1773_p11)
}
 0x37d   : > { %s1866_s10 = smov 128   ;;  %s1867_s18 = smov 8   ;;  %v1270_v57 = vld [vmem:[%s311_s11] ss:$0 sm:$0xff] }
 0x37e   : > { %1502 = dma.vmem_to_hbm [thread:$0]  (%p1528_p12), %s1131_s15, 2048, %s2276_s6, [#allocation11], %s1866_s10, %s1866_s10, %s1867_s18  }
 0x37f   : > { %s1868_s8 = smov [#allocation9]  }
 0x380   : > { %s1117_s26 = sshll.u32 %s1868_s8, 4  ;;  %s1118_s26 = int_to_ptr.vmem [resolvable:$true] %s1117_s26 }
 0x381   : > { %s1777_s30 = scalar_lea.vmem %s1118_s26, 2048  ;;  %p1784_p0 = scmp.lt.s32.totalorder %s1118_s26, %s1118_s26 }
 0x382   : > { %p1778_p13 = scmp.ne.s32.totalorder %s1118_s26, %s1777_s30  ;;  %p1785_p5 = scmp.lt.s32.totalorder %s1777_s30, %s1777_s30 }
 0x384   : > { %p1779_p8 = pnand %p1778_p13, %p1528_p12  ;;  %p1786_p9 = por %p1785_p5, %p1784_p0 }
 0x386   : > { %p1780_p10 = pneg %p1779_p8 }
 0x388   : > { %p1787_p1 = pnand %p1786_p9, %p1780_p10 }
 0x42c   : > { %v1455_v61 = vpop.f32.mrb[0].mxu1 }
 0x42d   : > { %v1025_v12 = vadd.f32 %v1455_v61, %v1270_v57  ;;  %v1016_v53 = vpop.f32.mrb[1].mxu1 }
 0x42e   : > { %v1017_v59 = vadd.f32 %v1270_v57, %v1016_v53  ;;  %v1456_v13 = vpop.f32.mrb[2].mxu1 }
 0x42f   : > { %v1081_v14 = vmax.f32 %v1025_v12, 0.0  ;;  %v1028_v15 = vadd.f32 %v1456_v13, %v1270_v57  ;;  %v1019_v16 = vpop.f32.mrb[3].mxu1 }
 0x430   : > { %v1079_v17 = vmax.f32 %v1017_v59, 0.0  ;;  %v1020_v18 = vadd.f32 %v1270_v57, %v1019_v16 }
 0x431   : > { %1097 = vst [vmem:[#allocation9 + $0x10] sm:$0xff] %v1081_v14  ;;  %v1082_v19 = vmax.f32 %v1028_v15, 0.0 }
 0x432   : > { %1095 = vst [vmem:[#allocation9] sm:$0xff] %v1079_v17  ;;  %v1080_v20 = vmax.f32 %v1020_v18, 0.0 }
 0x433   : > { %1098 = vst [vmem:[#allocation9 + $0x18] sm:$0xff] %v1082_v19 }
 0x434   : > { %1096 = vst [vmem:[#allocation9 + $0x8] sm:$0xff] %v1080_v20  ;;  %v1459_v21 = vpop.f32.mrb[4].mxu1 }
 0x435   : > { %v1041_v22 = vadd.f32 %v1459_v21, %v1270_v57  ;;  %v1032_v23 = vpop.f32.mrb[5].mxu1 }
 0x436   : > { %v1033_v24 = vadd.f32 %v1270_v57, %v1032_v23  ;;  %v1460_v25 = vpop.f32.mrb[6].mxu1 }
 0x437   : > { %v1085_v26 = vmax.f32 %v1041_v22, 0.0  ;;  %v1044_v27 = vadd.f32 %v1460_v25, %v1270_v57  ;;  %v1035_v28 = vpop.f32.mrb[7].mxu1 }
 0x438   : > { %v1083_v29 = vmax.f32 %v1033_v24, 0.0  ;;  %v1036_v30 = vadd.f32 %v1270_v57, %v1035_v28 }
 0x439   : > { %1101 = vst [vmem:[#allocation9 + $0x30] sm:$0xff] %v1085_v26  ;;  %v1086_v31 = vmax.f32 %v1044_v27, 0.0 }
 0x43a   : > { %1099 = vst [vmem:[#allocation9 + $0x20] sm:$0xff] %v1083_v29  ;;  %v1084_v32 = vmax.f32 %v1036_v30, 0.0 }
 0x43b   : > { %1102 = vst [vmem:[#allocation9 + $0x38] sm:$0xff] %v1086_v31 }
 0x43c   : > { %1100 = vst [vmem:[#allocation9 + $0x28] sm:$0xff] %v1084_v32  ;;  %v1463_v33 = vpop.f32.mrb[8].mxu1 }
 0x43d   : > { %v1057_v34 = vadd.f32 %v1463_v33, %v1270_v57  ;;  %v1048_v35 = vpop.f32.mrb[9].mxu1 }
 0x43e   : > { %v1049_v36 = vadd.f32 %v1270_v57, %v1048_v35  ;;  %v1464_v37 = vpop.f32.mrb[10].mxu1 }
 0x43f   : > { %v1089_v38 = vmax.f32 %v1057_v34, 0.0  ;;  %v1060_v39 = vadd.f32 %v1464_v37, %v1270_v57  ;;  %v1051_v40 = vpop.f32.mrb[11].mxu1 }
 0x440   : > { %v1087_v41 = vmax.f32 %v1049_v36, 0.0  ;;  %v1052_v42 = vadd.f32 %v1270_v57, %v1051_v40 }
 0x441   : > { %1105 = vst [vmem:[#allocation9 + $0x50] sm:$0xff] %v1089_v38  ;;  %v1090_v44 = vmax.f32 %v1060_v39, 0.0 }
 0x442   : > { %1103 = vst [vmem:[#allocation9 + $0x40] sm:$0xff] %v1087_v41  ;;  %v1088_v45 = vmax.f32 %v1052_v42, 0.0 }
 0x443   : > { %1106 = vst [vmem:[#allocation9 + $0x58] sm:$0xff] %v1090_v44 }
 0x444   : > { %1104 = vst [vmem:[#allocation9 + $0x48] sm:$0xff] %v1088_v45  ;;  %v1467_v43 = vpop.f32.mrb[12].mxu1 }
 0x445   : > { %v1073_v46 = vadd.f32 %v1467_v43, %v1270_v57  ;;  %v1064_v47 = vpop.f32.mrb[13].mxu1 }
 0x446   : > { %v1065_v50 = vadd.f32 %v1270_v57, %v1064_v47  ;;  %v1468_v51 = vpop.f32.mrb[14].mxu1 }
 0x447   : > { %v1093_v54 = vmax.f32 %v1073_v46, 0.0  ;;  %v1076_v55 = vadd.f32 %v1468_v51, %v1270_v57  ;;  %v1067_v62 = vpop.f32.mrb[15].mxu1 }
 0x448   : > { %v1091_v48 = vmax.f32 %v1065_v50, 0.0  ;;  %v1068_v63 = vadd.f32 %v1270_v57, %v1067_v62 }
 0x449   : > { %1109 = vst [vmem:[#allocation9 + $0x70] sm:$0xff] %v1093_v54  ;;  %v1094_v49 = vmax.f32 %v1076_v55, 0.0 }
 0x44a   : > { %1107 = vst [vmem:[#allocation9 + $0x60] sm:$0xff] %v1091_v48  ;;  %v1092_v0 = vmax.f32 %v1068_v63, 0.0 }
 0x44b   : > { %1110 = vst [vmem:[#allocation9 + $0x78] sm:$0xff] %v1094_v49 }
 0x44c   : > { %1108 = vst [vmem:[#allocation9 + $0x68] sm:$0xff] %v1092_v0 }
 0x44d   : > { %1790 = shalt.err (!%p1787_p1)
}
 0x44e   : > { %s2303_s11 = sld [smem:[#allocation20_spill]] }
 0x454   : > { %s1791_s7 = scalar_lea.hbm %s2303_s11, 2048 }
 0x455   : > { %p1792_p3 = scmp.ne.s32.totalorder %s2303_s11, %s1791_s7  ;;  %p1797_p6 = scmp.lt.u32.totalorder %s1791_s7, %s2303_s11 }
 0x457   : > { %p1793_p4 = pnand %p1792_p3, %p1528_p12 }
 0x459   : > { %p1794_p2 = pneg %p1793_p4 }
 0x45b   : > { %p1799_p7 = pnand %p1797_p6, %p1794_p2 }
 0x45d   : > { %1802 = shalt.err (!%p1799_p7)
}
 0x45e   : > { %1500 = dma.vmem_to_hbm [thread:$0]  (%p1528_p12), %s1118_s26, 2048, %s2303_s11, [#allocation4], %s1866_s10, %s1866_s10, %s1867_s18  }
 0x45f   : > { %1836 = dma.done.wait (%p1528_p12), [#allocation4], 2048  }
 0x460   : > { %1838 = vsyncadd (%p1528_p12), [#allocation4], 4294965248 }
 0x461   : > { %1840 = dma.done.wait (%p1528_p12), [#allocation11], 2048  }
 0x462   : > { %1842 = vsyncadd (%p1528_p12), [#allocation11], 4294965248 }
 0x463 PF: > { %s2304_s24 = sld [smem:[#allocation18_spill]]  ;;  %s2305_s14 = sld [smem:[#allocation19_spill]] }
 0x464   : > { %s2306_s21 = smov %s1849_s22  ;;  %s2307_s22 = smov %s1853_s23 }
 0x469   : > { %p18_p11 = scmp.ge.s32.totalorder %s2304_s24, 4   ;;  %s2308_s23 = smov %s2305_s14 }
 0x46b   :  { %20 = sbr.rel (!%p18_p11) target bundleno = 7 (0x7), region = 103 }
 0x472   :  { %1150 = vsyncpa [#allocation3], 1 }
 0x473   :  { %1152 = vsyncpa [#allocation3 + $0x1], 1 }
 0x474   :  { %1153 = vsyncpa [#allocation6], 1 }
 0x475   :  { %1154 = vsyncpa [#allocation4], 1 }
 0x476   :  { %1156 = vsyncpa [#allocation4 + $0x1], 1 }
 0x477   :  { %1157 = vsyncpa [#allocation11], 1 }

// kernel: tpu_custom_call.1
= control target key start
LH: loop header
LB: loop body
LE: loop exit
PB: predicated region body
PF: predicated region fallthrough
CT: control target
= control target key end

     0   :  { %s2270_s0 = inlined_call_operand.hbm [shape: bf16[128,128], index: 0, kind: input, shape index: {}]   ;;  %s2271_s1 = inlined_call_operand.hbm [shape: bf16[128,128], index: 1, kind: input, shape index: {}]   ;;  %s2272_s2 = inlined_call_operand.hbm [shape: bf16[2,128,128], index: 2, kind: input, shape index: {}]   ;;  %s2273_s3 = inlined_call_operand.vmem [shape: f32[2,1,128], index: 3, kind: input, shape index: {}]   ;;  %s2274_s4 = inlined_call_operand.hbm [shape: bf16[128,128], index: 4, kind: input, shape index: {}]   ;;  %s2275_s5 = inlined_call_operand.hbm [shape: f32[128,128], index: 5, kind: output, shape index: {0}]   ;;  %s2276_s6 = inlined_call_operand.hbm [shape: f32[128,128], index: 6, kind: output, shape index: {1}]  }
   0x1   :  { %2284 = sst [smem:[#allocation20_spill]] %s2275_s5 }
   0x2   :  { %12 = vsyncpa [#allocation3], 0 }
   0x3   :  { %13 = vsyncpa [#allocation6], 0 }
   0x4   :  { %14 = vsyncpa [#allocation4], 0 }
   0x5   :  { %15 = vsyncpa [#allocation11], 0  ;;  %s1904_s21 = smov 0   ;;  %s1906_s22 = smov 0  }
   0x6   :  { %s1908_s23 = smov 0   ;;  %s1910_s24 = smov 0  }
   0x7 LB: > { %s1923_s25 = sadd.s32 4294967295, %s1857_s24   ;;  %s1926_s26 = sadd.s32 1, %s1857_s24   ;;  %s1857_s24 = sphi %s1910_s24, %s2304_s24   ;;  %s1853_s23 = sphi %s1908_s23, %s2308_s23   ;;  %s1849_s22 = sphi %s1906_s22, %s2307_s22   ;;  %s1845_s21 = sphi %s1904_s21, %s2306_s21  }
   0x8   : > { %2285 = sst [smem:[#allocation18_spill]] %s1926_s26  ;;  %s67_s27 = ssub.s32 %s1857_s24, %s1926_s26 }
   0x9   : > { %s70_s28 = sadd.s32 1, %s1853_s23  ;;  %p68_p0 = scmp.eq.s32.totalorder %s67_s27, 0 }
   0xa   : > { %p77_p1 = scmp.ne.s32.totalorder %s1853_s23, %s1849_s22  ;;  %p78_p2 = scmp.eq.s32.totalorder %s1857_s24, 0 }
   0xb   : > { %p83_p3 = scmp.ne.s32.totalorder %s1849_s22, %s1845_s21  ;;  %p2277_p5 = scmp.eq.s32.totalorder %s1923_s25, 0 }
   0xc   : > { %s1936_s29 = scalar_select %p68_p0, %s1853_s23, %s70_s28  }
   0xd   : > { %p1938_p4 = por %p78_p2, %p77_p1  ;;  %p1232_p6 = scmp.ge.s32.totalorder %s1857_s24, 1 }
   0xe   : > { %2286 = sst [smem:[#allocation19_spill]] %s1936_s29  ;;  %p183_p7 = scmp.lt.s32.totalorder %s1857_s24, 3 }
   0xf   : > { %p1947_p8 = por %p2277_p5, %p83_p3  ;;  %s1859_s9 = smov [#allocation2]  }
  0x10   : > { %p1952_p10 = pnand %p1232_p6, %p183_p7  ;;  %s195_s10 = sshll.u32 %s1859_s9, 4  ;;  %s196_s10 = int_to_ptr.vmem [resolvable:$true] %s195_s10 }
  0x11   : > { %s2288_s7 = scalar_select %p1947_p8, 1, 0 }
  0x12   : > { %s2289_s8 = scalar_select %p1952_p10, 1, 0 }
  0x13   : > { %p1507_p11 = pneg %p1952_p10  ;;  %p1524_p13 = scmp.lt.s32.totalorder %s1857_s24, 2 }
  0x14   : > { %s1637_s15 = scalar_lea.hbm %s2270_s0, 1024 }
  0x15   : > { %p1960_p12 = pnand %p1507_p11, %p2277_p5  ;;  %p1967_p0 = pnand %p1524_p13, %p1938_p4 }
  0x16   : > { %p1638_p1 = scmp.ne.s32.totalorder %s2270_s0, %s1637_s15  ;;  %p1644_p6 = scmp.lt.u32.totalorder %s1637_s15, %s2270_s0 }
  0x17   : > { %s2291_s12 = scalar_select %p1967_p0, 1, 0 }
  0x18   : > { %p1979_p2 = pneg %p1960_p12 }
  0x1a   : > { %p1640_p3 = pnand %p1979_p2, %p1638_p1 }
  0x1c   : > { %p1641_p4 = pneg %p1640_p3 }
  0x1e   : > { %p1646_p7 = pnand %p1644_p6, %p1641_p4 }
  0x20   : > { %1649 = shalt.err (!%p1646_p7)
}
  0x21   : > { %s1650_s21 = scalar_lea.vmem %s196_s10, 1024  ;;  %p1658_p5 = scmp.lt.s32.totalorder %s196_s10, %s196_s10 }
  0x22   : > { %p1651_p11 = scmp.ne.s32.totalorder %s196_s10, %s1650_s21  ;;  %p1659_p8 = scmp.lt.s32.totalorder %s1650_s21, %s1650_s21 }
  0x24   : > { %p1653_p13 = pnand %p1651_p11, %p1979_p2  ;;  %p1660_p10 = por %p1659_p8, %p1658_p5 }
  0x26   : > { %p1654_p9 = pneg %p1653_p13 }
  0x28   : > { %p1661_p0 = pnand %p1660_p10, %p1654_p9 }
  0x2a   : > { %1664 = shalt.err (!%p1661_p0)
}
  0x2b   : > { %s1860_s27 = smov 64   ;;  %s1861_s28 = smov 4  }
  0x2c   : > { %1510 = dma.hbm_to_vmem [thread:$0]  (!%p1960_p12), %s2270_s0, 1024, %s196_s10, [#allocation3], %s1860_s27, %s1860_s27, %s1861_s28  }
  0x2d   : > { %s1862_s13 = smov [#allocation5]   ;;  %s1863_s15 = smov [#allocation8]  }
  0x2e   : > { %s208_s14 = sshll.u32 %s1862_s13, 4  ;;  %s221_s16 = sshll.u32 %s1863_s15, 4  ;;  %s209_s14 = int_to_ptr.vmem [resolvable:$true] %s208_s14  ;;  %s222_s16 = int_to_ptr.vmem [resolvable:$true] %s221_s16 }
  0x2f   : > { %s1665_s20 = scalar_lea.hbm %s2271_s1, 1024 }
  0x30   : > { %p1666_p5 = scmp.ne.s32.totalorder %s2271_s1, %s1665_s20  ;;  %p1672_p10 = scmp.lt.u32.totalorder %s1665_s20, %s2271_s1 }
  0x32   : > { %p1668_p8 = pnand %p1666_p5, %p1979_p2 }
  0x34   : > { %p1669_p9 = pneg %p1668_p8 }
  0x36   : > { %p1674_p0 = pnand %p1672_p10, %p1669_p9 }
  0x38   : > { %1677 = shalt.err (!%p1674_p0)
}
  0x39   : > { %s1678_s10 = scalar_lea.vmem %s209_s14, 1024  ;;  %p1686_p6 = scmp.lt.s32.totalorder %s209_s14, %s209_s14 }
  0x3a   : > { %p1679_p1 = scmp.ne.s32.totalorder %s209_s14, %s1678_s10  ;;  %p1687_p7 = scmp.lt.s32.totalorder %s1678_s10, %s1678_s10 }
  0x3c   : > { %p1681_p3 = pnand %p1679_p1, %p1979_p2  ;;  %p1688_p11 = por %p1687_p7, %p1686_p6 }
  0x3e   : > { %p1682_p4 = pneg %p1681_p3 }
  0x40   : > { %p1689_p13 = pnand %p1688_p11, %p1682_p4 }
  0x42   : > { %1692 = shalt.err (!%p1689_p13)
}
  0x43   : > { %1513 = dma.hbm_to_vmem [thread:$0]  (!%p1960_p12), %s2271_s1, 1024, %s209_s14, [#allocation6], %s1860_s27, %s1860_s27, %s1861_s28  }
  0x44   : > { %s235_s29 = sand.u32 1, %s1857_s24   ;;  %s1693_s13 = scalar_lea.hbm %s2274_s4, 1024 }
  0x45   : > { %p1694_p5 = scmp.ne.s32.totalorder %s2274_s4, %s1693_s13  ;;  %p1700_p10 = scmp.lt.u32.totalorder %s1693_s13, %s2274_s4 }
  0x47   : > { %p1696_p8 = pnand %p1694_p5, %p1979_p2 }
  0x49   : > { %p1697_p9 = pneg %p1696_p8 }
  0x4b   : > { %p1702_p0 = pnand %p1700_p10, %p1697_p9 }
  0x4d   : > { %1705 = shalt.err (!%p1702_p0)
}
  0x4e   : > { %s1706_s14 = scalar_lea.vmem %s222_s16, 1024  ;;  %p1714_p6 = scmp.lt.s32.totalorder %s222_s16, %s222_s16 }
  0x4f   : > { %p1707_p1 = scmp.ne.s32.totalorder %s222_s16, %s1706_s14  ;;  %p1715_p7 = scmp.lt.s32.totalorder %s1706_s14, %s1706_s14 }
  0x51   : > { %p1709_p3 = pnand %p1707_p1, %p1979_p2  ;;  %p1716_p11 = por %p1715_p7, %p1714_p6 }
  0x53   : > { %p1710_p4 = pneg %p1709_p3 }
  0x55   : > { %p1717_p13 = pnand %p1716_p11, %p1710_p4 }
  0x57   : > { %1720 = shalt.err (!%p1717_p13)
}
  0x58   : > { %1516 = dma.hbm_to_vmem [thread:$0]  (!%p1960_p12), %s2274_s4, 1024, %s222_s16, [#allocation6], %s1860_s27, %s1860_s27, %s1861_s28  }
  0x59   : > { %s237_s18 = sand.u32 1, %s1853_s23   ;;  %s1285_s26 = sshll.u32 %s1857_s24, 10 }
  0x5a   : > { %s1237_s5 = sshll.u32 %s237_s18, 6  ;;  %s2046_s13 = scalar_lea.hbm %s2272_s2, %s1285_s26 }
  0x5b   : > { %s239_s11 = scalar_lea.vmem [#allocation7], %s1237_s5  ;;  %s2050_s17 = scalar_lea.sflag [#allocation3], %s235_s29 }
  0x5c   : > { %s246_s15 = sshll.u32 %s239_s11, 4  ;;  %s1721_s19 = scalar_lea.hbm %s2046_s13, 1024  ;;  %s2048_s15 = int_to_ptr.vmem [resolvable:$true] %s246_s15 }
  0x5d   : > { %p1722_p12 = scmp.ne.s32.totalorder %s2046_s13, %s1721_s19  ;;  %p2293_p2 = scmp.ne.s32.totalorder %s2291_s12, 0 }
  0x5e   : > { %s1726_s20 = scalar_lea.hbm %s2272_s2, 2048  ;;  %p1727_p10 = scmp.lt.u32.totalorder %s2046_s13, %s2272_s2 }
  0x5f   : > { %p1723_p5 = pneg %p2293_p2  ;;  %p1728_p0 = scmp.lt.u32.totalorder %s1726_s20, %s1721_s19 }
  0x60   : > { %p1730_p3 = scmp.lt.u32.totalorder %s1721_s19, %s2046_s13 }
  0x61   : > { %p1724_p8 = pnand %p1723_p5, %p1722_p12  ;;  %p1729_p1 = por %p1728_p0, %p1727_p10 }
  0x63   : > { %p1725_p9 = pneg %p1724_p8  ;;  %p1731_p4 = por %p1730_p3, %p1729_p1 }
  0x65   : > { %p1732_p6 = pnand %p1731_p4, %p1725_p9 }
  0x67   : > { %1735 = shalt.err (!%p1732_p6)
}
  0x68   : > { %s1736_s29 = scalar_lea.vmem %s2048_s15, 1024  ;;  %s1864_s10 = smov [#allocation7]  }
  0x69   : > { %p1737_p7 = scmp.ne.s32.totalorder %s2048_s15, %s1736_s29  ;;  %s1741_s18 = sshll.u32 %s1864_s10, 4  ;;  %s1742_s18 = int_to_ptr.vmem [resolvable:$false] %s1741_s18 }
  0x6a   : > { %s1743_s5 = scalar_lea.vmem %s1742_s18, 2048  ;;  %p1744_p12 = scmp.lt.s32.totalorder %s2048_s15, %s1742_s18 }
  0x6b   : > { %p1739_p11 = pnand %p1737_p7, %p1723_p5  ;;  %p1745_p8 = scmp.lt.s32.totalorder %s1743_s5, %s1736_s29 }
  0x6d   : > { %p1740_p13 = pneg %p1739_p11  ;;  %p1746_p10 = por %p1745_p8, %p1744_p12 }
  0x6f   : > { %p1747_p0 = pnand %p1746_p10, %p1740_p13 }
  0x71   : > { %1750 = shalt.err (!%p1747_p0)
}
  0x72   : > { %1520 = dma.hbm_to_vmem [thread:$0]  (!%p2293_p2), %s2046_s13, 1024, %s2048_s15, %s2050_s17, %s1860_s27, %s1860_s27, %s1861_s28  }
  0x73   : > { %p2294_p5 = scmp.ne.s32.totalorder %s2289_s8, 0 }
  0x74   : > { %p2295_p9 = scmp.eq.s32.totalorder (!%p2294_p5), %s1923_s25, 0 }
  0x75   : > { %264 = sbr.rel (%p2294_p5) target bundleno = 1123 (0x463), region = 40 }
  0x7c   : > { %1820 = dma.done.wait (%p2295_p9), [#allocation3], 1024   ;;  %p2296_p1 = pmov %p2295_p9 }
  0x7e   : > { %1822 = vsyncadd (%p2296_p1), [#allocation3], 4294966272  ;;  %p2297_p3 = pmov %p2296_p1 }
  0x7f   : > { %p2298_p4 = pmov %p2296_p1 }
  0x80   : > { %1824 = dma.done.wait (%p2297_p3), [#allocation6], 1024  }
  0x81   : > { %1826 = vsyncadd (%p2298_p4), [#allocation6], 4294966272  ;;  %s274_s12 = sand.u32 1, %s1923_s25   ;;  %s276_s27 = sand.u32 1, %s1849_s22  }
  0x82   : > { %s1243_s28 = sshll.u32 %s276_s27, 6  ;;  %s275_s8 = scalar_lea.sflag [#allocation3], %s274_s12 }
  0x83   : > { %s2093_s26 = scalar_lea.vmem [#allocation7], %s1243_s28  ;;  %p2299_p2 = scmp.ne.s32.totalorder %s2288_s7, 0 }
  0x85   : > { %1828 = dma.done.wait (%p2299_p2), %s275_s8, 1024  }
  0x86   : > { %1830 = vsyncadd (%p2299_p2), %s275_s8, 4294966272  ;;  %p2300_p6 = pmov %p2296_p1 }
  0x87   : > { %p2301_p7 = pmov %p2296_p1 }
  0x88   : > { %1832 = dma.done.wait (%p2300_p6), [#allocation6], 1024  }
  0x89   : > { %1834 = vsyncadd (%p2301_p7), [#allocation6], 4294966272  ;;  %p309_p11 = scmp.lt.s32.totalorder %s1923_s25, 1  ;;  %p2302_p13 = scmp.ne.s32.totalorder %s1923_s25, 0 }
  0x8a   : > { %v1287_v0 = vld [vmem:[#allocation5] sm:$0xff] (!%p2302_p13)   ;;  %v1318_v1 = vld [vmem:[#allocation5 + $0x8] sm:$0xff] (!%p2302_p13)   ;;  %v1319_v2 = vld [vmem:[#allocation5 + $0x10] sm:$0xff] (!%p2302_p13)  }
  0x8b   : > { %s2105_s30 = scalar_select %p309_p11, %s1923_s25, 1 }
  0x8c   : > { %316 = sbr.rel (%p2302_p13) target bundleno = 575 (0x23f), region = 60  ;;  %v1288_v3 = vunpack.c.l.bf16 (!%p2302_p13), %v1287_v0  ;;  %v1289_v4 = vunpack.c.h.bf16 (!%p2302_p13), %v1287_v0  ;;  %v1292_v5 = vunpack.c.l.bf16 (!%p2302_p13), %v1318_v1  ;;  %v1293_v6 = vunpack.c.h.bf16 (!%p2302_p13), %v1318_v1  ;;  %v1320_v7 = vld [vmem:[#allocation5 + $0x18] sm:$0xff] (!%p2302_p13)   ;;  %v1321_v8 = vld [vmem:[#allocation5 + $0x20] sm:$0xff] (!%p2302_p13)   ;;  %v1322_v9 = vld [vmem:[#allocation5 + $0x28] sm:$0xff] (!%p2302_p13)  }
  0x8d   : > { %s311_s11 = scalar_lea.vmem %s2273_s3, %s2105_s30  ;;  %v1296_v10 = vunpack.c.l.bf16 (!%p2302_p13), %v1319_v2  ;;  %v1297_v11 = vunpack.c.h.bf16 (!%p2302_p13), %v1319_v2  ;;  %v1300_v12 = vunpack.c.l.bf16 (!%p2302_p13), %v1320_v7  ;;  %v1301_v13 = vunpack.c.h.bf16 (!%p2302_p13), %v1320_v7  ;;  %v1323_v14 = vld [vmem:[#allocation5 + $0x30] sm:$0xff] (!%p2302_p13)   ;;  %v1324_v15 = vld [vmem:[#allocation5 + $0x38] sm:$0xff] (!%p2302_p13)   ;;  %v1573_v20 = vld [vmem:[#allocation8] sm:$0xff] (!%p2302_p13)  }
  0x8e   : > { %v1304_v16 = vunpack.c.l.bf16 (!%p2302_p13), %v1321_v8  ;;  %v1305_v17 = vunpack.c.h.bf16 (!%p2302_p13), %v1321_v8  ;;  %v1308_v18 = vunpack.c.l.bf16 (!%p2302_p13), %v1322_v9  ;;  %v1309_v19 = vunpack.c.h.bf16 (!%p2302_p13), %v1322_v9  ;;  %349 = vst [vmem:[#allocation9] sm:$0xff] (!%p2302_p13), %v1288_v3  ;;  %350 = vst [vmem:[#allocation9 + $0x8] sm:$0xff] (!%p2302_p13), %v1289_v4  ;;  %v1574_v25 = vld [vmem:[#allocation8 + $0x8] sm:$0xff] (!%p2302_p13)   ;;  %1373 = vmatprep.subr.bf16.mxu0 (!%p2302_p13), %v1573_v20  ;;  %1469 = vmatprep.subr.bf16.mxu1 (!%p2302_p13), %v1573_v20  ;;  %v1575_v26 = vld [vmem:[#allocation8 + $0x10] sm:$0xff] (!%p2302_p13)  }
  0x8f   : > { %351 = vst [vmem:[#allocation9 + $0x10] sm:$0xff] (!%p2302_p13), %v1292_v5  ;;  %352 = vst [vmem:[#allocation9 + $0x18] sm:$0xff] (!%p2302_p13), %v1293_v6  ;;  %v1312_v21 = vunpack.c.l.bf16 (!%p2302_p13), %v1323_v14  ;;  %v1313_v22 = vunpack.c.h.bf16 (!%p2302_p13), %v1323_v14  ;;  %v1316_v23 = vunpack.c.l.bf16 (!%p2302_p13), %v1324_v15  ;;  %v1317_v24 = vunpack.c.h.bf16 (!%p2302_p13), %v1324_v15  ;;  %1374 = vmatpush3.bf16.msra.mxu0 (!%p2302_p13), %v1573_v20  ;;  %1477 = vmatpush3.bf16.msra.mxu1 (!%p2302_p13), %v1573_v20  ;;  %v1576_v27 = vld [vmem:[#allocation8 + $0x18] sm:$0xff] (!%p2302_p13)   ;;  %v1581_v28 = vld [vmem:[#allocation5] sm:$0xff] (!%p2302_p13)  }
  0x90   : > { %353 = vst [vmem:[#allocation9 + $0x20] sm:$0xff] (!%p2302_p13), %v1296_v10  ;;  %354 = vst [vmem:[#allocation9 + $0x28] sm:$0xff] (!%p2302_p13), %v1297_v11  ;;  %1375 = vmatprep.subr.bf16.mxu0 (!%p2302_p13), %v1574_v25  ;;  %1470 = vmatprep.subr.bf16.mxu1 (!%p2302_p13), %v1574_v25  ;;  %v1582_v29 = vld [vmem:[#allocation5 + $0x20] sm:$0xff] (!%p2302_p13)   ;;  %v1578_v31 = vld [vmem:[#allocation8 + $0x28] sm:$0xff] (!%p2302_p13)  }
  0x91   : > { %355 = vst [vmem:[#allocation9 + $0x30] sm:$0xff] (!%p2302_p13), %v1300_v12  ;;  %356 = vst [vmem:[#allocation9 + $0x38] sm:$0xff] (!%p2302_p13), %v1301_v13  ;;  %1389 = vmatprep.mubr.bf16.mxu0 (!%p2302_p13), %v1581_v28  ;;  %v1577_v30 = vld [vmem:[#allocation8 + $0x20] sm:$0xff] (!%p2302_p13)   ;;  %1397 = vmatprep.mubr.bf16.mxu1 (!%p2302_p13), %v1582_v29  ;;  %v1579_v32 = vld [vmem:[#allocation8 + $0x30] sm:$0xff] (!%p2302_p13)  }
  0x92   : > { %357 = vst [vmem:[#allocation9 + $0x40] sm:$0xff] (!%p2302_p13), %v1304_v16  ;;  %358 = vst [vmem:[#allocation9 + $0x48] sm:$0xff] (!%p2302_p13), %v1305_v17  ;;  %v1580_v33 = vld [vmem:[#allocation8 + $0x38] sm:$0xff] (!%p2302_p13)   ;;  %v1583_v34 = vld [vmem:[#allocation5 + $0x8] sm:$0xff] (!%p2302_p13)  }
  0x93   : > { %359 = vst [vmem:[#allocation9 + $0x50] sm:$0xff] %v1308_v18  ;;  %360 = vst [vmem:[#allocation9 + $0x58] sm:$0xff] %v1309_v19  ;;  %1376 = vmatpush3.bf16.msra.mxu0 %v1574_v25  ;;  %1478 = vmatpush3.bf16.msra.mxu1 %v1574_v25  ;;  %v1584_v35 = vld [vmem:[#allocation5 + $0x28] sm:$0xff]   ;;  %v1585_v36 = vld [vmem:[#allocation5 + $0x10] sm:$0xff]  }
  0x94   : > { %361 = vst [vmem:[#allocation9 + $0x60] sm:$0xff] %v1312_v21  ;;  %362 = vst [vmem:[#allocation9 + $0x68] sm:$0xff] %v1313_v22  ;;  %1377 = vmatprep.subr.bf16.mxu0 %v1575_v26  ;;  %1471 = vmatprep.subr.bf16.mxu1 %v1575_v26  ;;  %v1587_v37 = vld [vmem:[#allocation5 + $0x30] sm:$0xff]   ;;  %v1586_v38 = vld [vmem:[#allocation5 + $0x18] sm:$0xff]  }
  0x95   : > { %363 = vst [vmem:[#allocation9 + $0x70] sm:$0xff] %v1316_v23  ;;  %364 = vst [vmem:[#allocation9 + $0x78] sm:$0xff] %v1317_v24  ;;  %v1588_v39 = vld [vmem:[#allocation5 + $0x38] sm:$0xff]  }
  0x97   : > { %1378 = vmatpush3.bf16.msra.mxu0 %v1575_v26  ;;  %1479 = vmatpush3.bf16.msra.mxu1 %v1575_v26 }
  0x98   : > { %1379 = vmatprep.subr.bf16.mxu0 %v1576_v27  ;;  %1472 = vmatprep.subr.bf16.mxu1 %v1576_v27 }
  0x9b   : > { %1380 = vmatpush3.bf16.msra.mxu0 %v1576_v27  ;;  %1480 = vmatpush3.bf16.msra.mxu1 %v1576_v27 }
  0x9c   : > { %1381 = vmatprep.subr.bf16.mxu0 %v1577_v30  ;;  %1473 = vmatprep.subr.bf16.mxu1 %v1577_v30 }
  0x9f   : > { %1382 = vmatpush3.bf16.msra.mxu0 %v1577_v30  ;;  %1481 = vmatpush3.bf16.msra.mxu1 %v1577_v30 }
  0xa0   : > { %1383 = vmatprep.subr.bf16.mxu0 %v1578_v31  ;;  %1474 = vmatprep.subr.bf16.mxu1 %v1578_v31 }
  0xa3   : > { %1384 = vmatpush3.bf16.msra.mxu0 %v1578_v31  ;;  %1482 = vmatpush3.bf16.msra.mxu1 %v1578_v31 }
  0xa4   : > { %1385 = vmatprep.subr.bf16.mxu0 %v1579_v32  ;;  %1475 = vmatprep.subr.bf16.mxu1 %v1579_v32 }
  0xa7   : > { %1386 = vmatpush3.bf16.msra.mxu0 %v1579_v32  ;;  %1483 = vmatpush3.bf16.msra.mxu1 %v1579_v32 }
  0xa8   : > { %1387 = vmatprep.subr.bf16.mxu0 %v1580_v33  ;;  %1476 = vmatprep.subr.bf16.mxu1 %v1580_v33 }
  0xab   : > { %1388 = vmatpush3.bf16.msra.mxu0 %v1580_v33  ;;  %1484 = vmatpush3.bf16.msra.mxu1 %v1580_v33 }
  0xae   : > { %1390 = vmatmul.mubr.bf16.vlgmr.msra.gmra.mrb[0].mxu0 %v1583_v34  ;;  %1398 = vmatmul.mubr.bf16.vlgmr.msra.gmra.mrb[0].mxu1 %v1584_v35 }
  0xaf   : > { %1393 = vmatprep.mubr.bf16.mxu0 %v1585_v36  ;;  %1401 = vmatprep.mubr.bf16.mxu1 %v1587_v37 }
  0xb6   : > { %1394 = vmatmul.mubr.bf16.gmra.mrb[4].mxu0 %v1586_v38  ;;  %1402 = vmatmul.mubr.bf16.gmra.mrb[4].mxu1 %v1588_v39 }
 0x181   : > { %v2113_v40 = vpop.f32.mrb[0].mxu0  ;;  %v2115_v41 = vpop.f32.mrb[0].mxu1 }
 0x182   : > { %v2117_v42 = vpop.f32.mrb[1].mxu0  ;;  %v2119_v43 = vpop.f32.mrb[1].mxu1  ;;  %v600_v44 = vmul.f32 %v2115_v41, %v2115_v41  ;;  %v592_v45 = vmul.f32 %v2113_v40, %v2113_v40 }
 0x183   : > { %v2125_v46 = vpop.f32.mrb[2].mxu0  ;;  %v2127_v47 = vpop.f32.mrb[2].mxu1  ;;  %v590_v50 = vmul.f32 %v2117_v42, %v2117_v42  ;;  %v598_v54 = vmul.f32 %v2119_v43, %v2119_v43 }
 0x184   : > { %626 = vadd.xlane.f32.xlu0 %v600_v44  ;;  %v2129_v48 = vpop.f32.mrb[3].mxu1  ;;  %610 = vadd.xlane.f32.xlu1 %v592_v45  ;;  %v2131_v49 = vpop.f32.mrb[3].mxu0  ;;  %v593_v51 = vmul.f32 %v2125_v46, %v2125_v46  ;;  %v601_v55 = vmul.f32 %v2127_v47, %v2127_v47 }
 0x185   : > { %v599_v62 = vmul.f32 %v2129_v48, %v2129_v48  ;;  %v591_v63 = vmul.f32 %v2131_v49, %v2131_v49 }
 0x188   : > { %606 = vadd.xlane.f32.xlu0 %v590_v50  ;;  %612 = vadd.xlane.f32.xlu1 %v593_v51 }
 0x189   : > { %v2137_v52 = vpop.f32.mrb[4].mxu0  ;;  %v2139_v53 = vpop.f32.mrb[4].mxu1 }
 0x18a   : > { %v2145_v56 = vpop.f32.mrb[5].mxu0  ;;  %v2147_v57 = vpop.f32.mrb[5].mxu1  ;;  %v596_v0 = vmul.f32 %v2137_v52, %v2137_v52  ;;  %v604_v6 = vmul.f32 %v2139_v53, %v2139_v53 }
 0x18b   : > { %v2149_v58 = vpop.f32.mrb[6].mxu0  ;;  %v2151_v59 = vpop.f32.mrb[6].mxu1  ;;  %v594_v3 = vmul.f32 %v2145_v56, %v2145_v56  ;;  %v602_v5 = vmul.f32 %v2147_v57, %v2147_v57 }
 0x18c   : > { %622 = vadd.xlane.f32.xlu0 %v598_v54  ;;  %628 = vadd.xlane.f32.xlu1 %v601_v55  ;;  %v2153_v60 = vpop.f32.mrb[7].mxu0  ;;  %v2155_v61 = vpop.f32.mrb[7].mxu1  ;;  %v597_v1 = vmul.f32 %v2149_v58, %v2149_v58  ;;  %v605_v7 = vmul.f32 %v2151_v59, %v2151_v59 }
 0x18d   : > { %v595_v2 = vmul.f32 %v2153_v60, %v2153_v60  ;;  %v603_v4 = vmul.f32 %v2155_v61, %v2155_v61 }
 0x190   : > { %624 = vadd.xlane.f32.xlu1 %v599_v62  ;;  %608 = vadd.xlane.f32.xlu0 %v591_v63 }
 0x194   : > { %618 = vadd.xlane.f32.xlu0 %v596_v0  ;;  %620 = vadd.xlane.f32.xlu1 %v597_v1 }
 0x198   : > { %614 = vadd.xlane.f32.xlu0 %v594_v3  ;;  %616 = vadd.xlane.f32.xlu1 %v595_v2 }
 0x19c   : > { %630 = vadd.xlane.f32.xlu0 %v602_v5  ;;  %632 = vadd.xlane.f32.xlu1 %v603_v4 }
 0x1a0   : > { %634 = vadd.xlane.f32.xlu0 %v604_v6  ;;  %636 = vadd.xlane.f32.xlu1 %v605_v7 }
 0x211   : > { %v627_v8 = vpop.xlane.xlu0 %626  ;;  %v611_v9 = vpop.xlane.xlu1 %610 }
 0x212   : > { %1589 = vrsqrt.f32 %v627_v8  ;;  %vm648_vm0 = vcmp.gt.f32.partialorder %v627_v8, 1.0  ;;  %vm640_vm1 = vcmp.gt.f32.partialorder %v611_v9, 1.0 }
 0x213   : > { %1591 = vrsqrt.f32 %v611_v9 }
 0x215   : > { %v607_v10 = vpop.xlane.xlu0 %606  ;;  %v613_v11 = vpop.xlane.xlu1 %612 }
 0x216   : > { %1593 = vrsqrt.f32 %v607_v10  ;;  %vm638_vm2 = vcmp.gt.f32.partialorder %v607_v10, 1.0  ;;  %vm641_vm3 = vcmp.gt.f32.partialorder %v613_v11, 1.0 }
 0x217   : > { %1595 = vrsqrt.f32 %v613_v11 }
 0x219   : > { %v623_v12 = vpop.xlane.xlu0 %622  ;;  %v629_v13 = vpop.xlane.xlu1 %628 }
 0x21a   : > { %1597 = vrsqrt.f32 %v623_v12  ;;  %vm646_vm4 = vcmp.gt.f32.partialorder %v623_v12, 1.0  ;;  %vm649_vm5 = vcmp.gt.f32.partialorder %v629_v13, 1.0 }
 0x21b   : > { %1599 = vrsqrt.f32 %v629_v13 }
 0x21c   : > { %v1590_v14 = vpop.eup %1589 }
 0x21d   : > { %v1592_v15 = vpop.eup %1591  ;;  %v680_v16 = vsel %vm648_vm0, %v1590_v14, 1.0  ;;  %v625_v17 = vpop.xlane.xlu1 %624 }
 0x21e   : > { %v609_v18 = vpop.xlane.xlu0 %608  ;;  %v696_v19 = vmul.f32 %v2115_v41, %v680_v16  ;;  %v672_v20 = vsel %vm640_vm1, %v1592_v15, 1.0  ;;  %1601 = vrsqrt.f32 %v625_v17  ;;  %vm647_vm6 = vcmp.gt.f32.partialorder %v625_v17, 1.0 }
 0x21f   : > { %v688_v21 = vmul.f32 %v2113_v40, %v672_v20  ;;  %1603 = vrsqrt.f32 %v609_v18  ;;  %vm639_vm7 = vcmp.gt.f32.partialorder %v609_v18, 1.0 }
 0x220   : > { %v1594_v22 = vpop.eup %1593  ;;  %712 = vst [vmem:[#allocation10 + $0x50] sm:$0xff] %v696_v19 }
 0x221   : > { %v1596_v23 = vpop.eup %1595  ;;  %704 = vst [vmem:[#allocation10 + $0x10] sm:$0xff] %v688_v21  ;;  %v670_v24 = vsel %vm638_vm2, %v1594_v22, 1.0  ;;  %v621_v26 = vpop.xlane.xlu1 %620 }
 0x222   : > { %v619_v25 = vpop.xlane.xlu0 %618  ;;  %v686_v27 = vmul.f32 %v670_v24, %v2117_v42  ;;  %v673_v28 = vsel %vm641_vm3, %v1596_v23, 1.0  ;;  %vm645_vm9 = vcmp.gt.f32.partialorder %v621_v26, 1.0 }
 0x223   : > { %1605 = vrsqrt.f32 %v619_v25  ;;  %v689_v29 = vmul.f32 %v2125_v46, %v673_v28  ;;  %vm644_vm8 = vcmp.gt.f32.partialorder %v619_v25, 1.0 }
 0x224   : > { %1607 = vrsqrt.f32 %v621_v26  ;;  %v1598_v30 = vpop.eup %1597  ;;  %702 = vst [vmem:[#allocation10] sm:$0xff] %v686_v27 }
 0x225   : > { %v1600_v31 = vpop.eup %1599  ;;  %705 = vst [vmem:[#allocation10 + $0x18] sm:$0xff] %v689_v29  ;;  %v678_v32 = vsel %vm646_vm4, %v1598_v30, 1.0  ;;  %v617_v34 = vpop.xlane.xlu1 %616 }
 0x226   : > { %v615_v33 = vpop.xlane.xlu0 %614  ;;  %v694_v35 = vmul.f32 %v678_v32, %v2119_v43  ;;  %v681_v36 = vsel %vm649_vm5, %v1600_v31, 1.0  ;;  %vm643_vm11 = vcmp.gt.f32.partialorder %v617_v34, 1.0 }
 0x227   : > { %1609 = vrsqrt.f32 %v615_v33  ;;  %v697_v37 = vmul.f32 %v2127_v47, %v681_v36  ;;  %vm642_vm10 = vcmp.gt.f32.partialorder %v615_v33, 1.0 }
 0x228   : > { %1611 = vrsqrt.f32 %v617_v34  ;;  %v1602_v38 = vpop.eup %1601  ;;  %710 = vst [vmem:[#allocation10 + $0x40] sm:$0xff] %v694_v35 }
 0x229   : > { %v1604_v39 = vpop.eup %1603  ;;  %713 = vst [vmem:[#allocation10 + $0x58] sm:$0xff] %v697_v37  ;;  %v679_v40 = vsel %vm647_vm6, %v1602_v38, 1.0  ;;  %v633_v42 = vpop.xlane.xlu1 %632 }
 0x22a   : > { %v631_v41 = vpop.xlane.xlu0 %630  ;;  %v695_v44 = vmul.f32 %v679_v40, %v2129_v48  ;;  %v671_v45 = vsel %vm639_vm7, %v1604_v39, 1.0  ;;  %vm651_vm13 = vcmp.gt.f32.partialorder %v633_v42, 1.0 }
 0x22b   : > { %1613 = vrsqrt.f32 %v631_v41  ;;  %v687_v43 = vmul.f32 %v671_v45, %v2131_v49  ;;  %vm650_vm12 = vcmp.gt.f32.partialorder %v631_v41, 1.0 }
 0x22c   : > { %1615 = vrsqrt.f32 %v633_v42  ;;  %711 = vst [vmem:[#allocation10 + $0x48] sm:$0xff] %v695_v44 }
 0x22d   : > { %v1606_v46 = vpop.eup %1605  ;;  %703 = vst [vmem:[#allocation10 + $0x8] sm:$0xff] %v687_v43  ;;  %v637_v54 = vpop.xlane.xlu1 %636 }
 0x22e   : > { %v1608_v47 = vpop.eup %1607  ;;  %v676_v50 = vsel %vm644_vm8, %v1606_v46, 1.0  ;;  %v635_v51 = vpop.xlane.xlu0 %634  ;;  %vm653_vm15 = vcmp.gt.f32.partialorder %v637_v54, 1.0 }
 0x22f   : > { %v692_v55 = vmul.f32 %v2137_v52, %v676_v50  ;;  %v677_v62 = vsel %vm645_vm9, %v1608_v47, 1.0  ;;  %1617 = vrsqrt.f32 %v635_v51  ;;  %vm652_vm14 = vcmp.gt.f32.partialorder %v635_v51, 1.0 }
 0x230   : > { %v693_v48 = vmul.f32 %v2149_v58, %v677_v62  ;;  %1619 = vrsqrt.f32 %v637_v54 }
 0x231   : > { %v1610_v63 = vpop.eup %1609  ;;  %708 = vst [vmem:[#allocation10 + $0x30] sm:$0xff] %v692_v55 }
 0x232   : > { %v1612_v49 = vpop.eup %1611  ;;  %709 = vst [vmem:[#allocation10 + $0x38] sm:$0xff] %v693_v48  ;;  %v674_v0 = vsel %vm642_vm10, %v1610_v63, 1.0 }
 0x233   : > { %v690_v1 = vmul.f32 %v674_v0, %v2145_v56  ;;  %v675_v2 = vsel %vm643_vm11, %v1612_v49, 1.0 }
 0x234   : > { %v691_v3 = vmul.f32 %v675_v2, %v2153_v60 }
 0x235   : > { %v1614_v4 = vpop.eup %1613  ;;  %706 = vst [vmem:[#allocation10 + $0x20] sm:$0xff] %v690_v1 }
 0x236   : > { %v1616_v52 = vpop.eup %1615  ;;  %707 = vst [vmem:[#allocation10 + $0x28] sm:$0xff] %v691_v3  ;;  %v682_v5 = vsel %vm650_vm12, %v1614_v4, 1.0 }
 0x237   : > { %v698_v58 = vmul.f32 %v682_v5, %v2147_v57  ;;  %v683_v6 = vsel %vm651_vm13, %v1616_v52, 1.0 }
 0x238   : > { %v699_v7 = vmul.f32 %v683_v6, %v2155_v61 }
 0x239   : > { %v1618_v8 = vpop.eup %1617  ;;  %714 = vst [vmem:[#allocation10 + $0x60] sm:$0xff] %v698_v58 }
 0x23a   : > { %v1620_v9 = vpop.eup %1619  ;;  %715 = vst [vmem:[#allocation10 + $0x68] sm:$0xff] %v699_v7  ;;  %v684_v56 = vsel %vm652_vm14, %v1618_v8, 1.0 }
 0x23b   : > { %v700_v60 = vmul.f32 %v2139_v53, %v684_v56  ;;  %v685_v10 = vsel %vm653_vm15, %v1620_v9, 1.0 }
 0x23c   : > { %v701_v11 = vmul.f32 %v2151_v59, %v685_v10 }
 0x23d   : > { %716 = vst [vmem:[#allocation10 + $0x70] sm:$0xff] %v700_v60 }
 0x23e   : > { %717 = vst [vmem:[#allocation10 + $0x78] sm:$0xff] %v701_v11 }
 0x23f PF: > { %v1621_v57 = vld [vmem:[%s2093_s26] sm:$0xff]   ;;  %v1622_v61 = vld [vmem:[%s2093_s26 + $0x8] sm:$0xff]   ;;  %v1623_v12 = vld [vmem:[%s2093_s26 + $0x10] sm:$0xff]   ;;  %p1528_p12 = scmp.eq.s32.totalorder %s1923_s25, 1  ;;  %s1865_s7 = smov [#allocation10]  }
 0x240   : > { %1405 = vmatprep.subr.bf16.mxu0 %v1621_v57  ;;  %v1624_v53 = vld [vmem:[%s2093_s26 + $0x18] sm:$0xff]   ;;  %v1625_v15 = vld [vmem:[%s2093_s26 + $0x20] sm:$0xff]   ;;  %v1626_v16 = vld [vmem:[%s2093_s26 + $0x28] sm:$0xff]   ;;  %s1130_s15 = sshll.u32 %s1865_s7, 4  ;;  %s1131_s15 = int_to_ptr.vmem [resolvable:$true] %s1130_s15 }
 0x241   : > { %1406 = vmatpush3.bf16.msra.mxu0 %v1621_v57  ;;  %v718_v59 = vld [vmem:[#allocation9] sm:$0xff]  ;;  %v719_v13 = vld [vmem:[#allocation9 + $0x8] sm:$0xff]  ;;  %v1627_v17 = vld [vmem:[%s2093_s26 + $0x30] sm:$0xff]   ;;  %s1751_s17 = scalar_lea.vmem %s1131_s15, 2048  ;;  %p1758_p5 = scmp.lt.s32.totalorder %s1131_s15, %s1131_s15 }
 0x242   : > { %1407 = vmatprep.subr.bf16.mxu0 %v1622_v61  ;;  %v734_v14 = vpack.c.bf16 %v719_v13, %v718_v59  ;;  %v1628_v18 = vld [vmem:[%s2093_s26 + $0x38] sm:$0xff]   ;;  %v720_v19 = vld [vmem:[#allocation9 + $0x10] sm:$0xff]  ;;  %v730_v33 = vld [vmem:[#allocation9 + $0x60] sm:$0xff]  ;;  %p1752_p8 = scmp.ne.s32.totalorder %s1131_s15, %s1751_s17  ;;  %p1759_p9 = scmp.lt.s32.totalorder %s1751_s17, %s1751_s17 }
 0x243   : > { %v721_v20 = vld [vmem:[#allocation9 + $0x18] sm:$0xff]  ;;  %v722_v21 = vld [vmem:[#allocation9 + $0x20] sm:$0xff]  ;;  %v723_v22 = vld [vmem:[#allocation9 + $0x28] sm:$0xff] }
 0x244   : > { %1421 = vmatprep.mubr.bf16.mxu0 %v734_v14  ;;  %v735_v23 = vpack.c.bf16 %v721_v20, %v720_v19  ;;  %v736_v24 = vpack.c.bf16 %v723_v22, %v722_v21  ;;  %v724_v25 = vld [vmem:[#allocation9 + $0x30] sm:$0xff]  ;;  %v725_v26 = vld [vmem:[#allocation9 + $0x38] sm:$0xff]  ;;  %v731_v34 = vld [vmem:[#allocation9 + $0x68] sm:$0xff]  ;;  %p1753_p10 = pnand %p1752_p8, %p1528_p12  ;;  %p1760_p1 = por %p1759_p9, %p1758_p5 }
 0x245   : > { %1408 = vmatpush3.bf16.msra.mxu0 %v1622_v61  ;;  %v726_v27 = vld [vmem:[#allocation9 + $0x40] sm:$0xff]  ;;  %v727_v28 = vld [vmem:[#allocation9 + $0x48] sm:$0xff]  ;;  %v737_v29 = vpack.c.bf16 %v725_v26, %v724_v25  ;;  %v728_v31 = vld [vmem:[#allocation9 + $0x50] sm:$0xff]  ;;  %v740_v36 = vpack.c.bf16 %v731_v34, %v730_v33 }
 0x246   : > { %1409 = vmatprep.subr.bf16.mxu0 %v1623_v12  ;;  %v738_v30 = vpack.c.bf16 %v727_v28, %v726_v27  ;;  %v729_v32 = vld [vmem:[#allocation9 + $0x58] sm:$0xff]  ;;  %v732_v37 = vld [vmem:[#allocation9 + $0x70] sm:$0xff]  ;;  %v1629_v40 = vld [vmem:[#allocation2] sm:$0xff]   ;;  %p1754_p0 = pneg %p1753_p10 }
 0x247   : > { %v739_v35 = vpack.c.bf16 %v729_v32, %v728_v31  ;;  %v733_v38 = vld [vmem:[#allocation9 + $0x78] sm:$0xff]  ;;  %1453 = vmatprep.mubr.bf16.mxu1 %v1629_v40  ;;  %v1630_v7 = vld [vmem:[#allocation2 + $0x8] sm:$0xff]   ;;  %v1631_v8 = vld [vmem:[#allocation2 + $0x10] sm:$0xff]  }
 0x248   : > { %v741_v39 = vpack.c.bf16 %v733_v38, %v732_v37  ;;  %v1632_v9 = vld [vmem:[#allocation2 + $0x18] sm:$0xff]   ;;  %v1633_v56 = vld [vmem:[#allocation2 + $0x20] sm:$0xff]   ;;  %v1634_v60 = vld [vmem:[#allocation2 + $0x28] sm:$0xff]   ;;  %p1761_p3 = pnand %p1760_p1, %p1754_p0 }
 0x249   : > { %1410 = vmatpush3.bf16.msra.mxu0 %v1623_v12  ;;  %v1635_v10 = vld [vmem:[#allocation2 + $0x30] sm:$0xff]   ;;  %v1636_v11 = vld [vmem:[#allocation2 + $0x38] sm:$0xff]  }
 0x24a   : > { %1411 = vmatprep.subr.bf16.mxu0 %v1624_v53 }
 0x24d   : > { %1412 = vmatpush3.bf16.msra.mxu0 %v1624_v53 }
 0x24e   : > { %1413 = vmatprep.subr.bf16.mxu0 %v1625_v15 }
 0x251   : > { %1414 = vmatpush3.bf16.msra.mxu0 %v1625_v15 }
 0x252   : > { %1415 = vmatprep.subr.bf16.mxu0 %v1626_v16 }
 0x255   : > { %1416 = vmatpush3.bf16.msra.mxu0 %v1626_v16 }
 0x256   : > { %1417 = vmatprep.subr.bf16.mxu0 %v1627_v17 }
 0x259   : > { %1418 = vmatpush3.bf16.msra.mxu0 %v1627_v17 }
 0x25a   : > { %1419 = vmatprep.subr.bf16.mxu0 %v1628_v18 }
 0x25d   : > { %1420 = vmatpush3.bf16.msra.mxu0 %v1628_v18 }
 0x260   : > { %1422 = vmatmul.mubr.bf16.vlgmr.msra.gmra.mrb[0].mxu0 %v735_v23 }
 0x261   : > { %1425 = vmatprep.mubr.bf16.mxu0 %v736_v24 }
 0x268   : > { %1426 = vmatmul.mubr.bf16.gmra.mrb[4].mxu0 %v737_v29 }
 0x269   : > { %1429 = vmatprep.mubr.bf16.mxu0 %v738_v30 }
 0x270   : > { %1430 = vmatmul.mubr.bf16.gmra.mrb[8].mxu0 %v739_v35 }
 0x271   : > { %1433 = vmatprep.mubr.bf16.mxu0 %v740_v36 }
 0x278   : > { %1434 = vmatmul.mubr.bf16.gmra.mrb[12].mxu0 %v741_v39 }
 0x333   : > { %v1423_v41 = vpop.f32.mrb[0].mxu0 }
 0x334   : > { %v840_v42 = vpop.f32.mrb[1].mxu0 }
 0x335   : > { %v1424_v44 = vpop.f32.mrb[2].mxu0 }
 0x336   : > { %v920_v45 = vpack.c.bf16 %v1424_v44, %v1423_v41  ;;  %v843_v43 = vpop.f32.mrb[3].mxu0 }
 0x337   : > { %v919_v46 = vpack.c.bf16 %v843_v43, %v840_v42 }
 0x339   : > { %1437 = vmatprep.subr.bf16.mxu1 %v919_v46 }
 0x33a   : > { %1438 = vmatpush3.bf16.msra.mxu1 %v919_v46 }
 0x33b   : > { %v1427_v47 = vpop.f32.mrb[4].mxu0  ;;  %1439 = vmatprep.subr.bf16.mxu1 %v920_v45 }
 0x33c   : > { %v856_v50 = vpop.f32.mrb[5].mxu0 }
 0x33d   : > { %v1428_v51 = vpop.f32.mrb[6].mxu0 }
 0x33e   : > { %v922_v54 = vpack.c.bf16 %v1428_v51, %v1427_v47  ;;  %v859_v55 = vpop.f32.mrb[7].mxu0  ;;  %1440 = vmatpush3.bf16.msra.mxu1 %v920_v45 }
 0x33f   : > { %v921_v62 = vpack.c.bf16 %v859_v55, %v856_v50 }
 0x341   : > { %1441 = vmatprep.subr.bf16.mxu1 %v921_v62 }
 0x342   : > { %1442 = vmatpush3.bf16.msra.mxu1 %v921_v62 }
 0x343   : > { %v1431_v48 = vpop.f32.mrb[8].mxu0  ;;  %1443 = vmatprep.subr.bf16.mxu1 %v922_v54 }
 0x344   : > { %v872_v63 = vpop.f32.mrb[9].mxu0 }
 0x345   : > { %v1432_v49 = vpop.f32.mrb[10].mxu0 }
 0x346   : > { %v924_v0 = vpack.c.bf16 %v1432_v49, %v1431_v48  ;;  %v875_v1 = vpop.f32.mrb[11].mxu0  ;;  %1444 = vmatpush3.bf16.msra.mxu1 %v922_v54 }
 0x347   : > { %v923_v2 = vpack.c.bf16 %v875_v1, %v872_v63 }
 0x349   : > { %1445 = vmatprep.subr.bf16.mxu1 %v923_v2 }
 0x34a   : > { %1446 = vmatpush3.bf16.msra.mxu1 %v923_v2 }
 0x34b   : > { %v1435_v3 = vpop.f32.mrb[12].mxu0  ;;  %1447 = vmatprep.subr.bf16.mxu1 %v924_v0 }
 0x34c   : > { %v888_v4 = vpop.f32.mrb[13].mxu0 }
 0x34d   : > { %v1436_v52 = vpop.f32.mrb[14].mxu0 }
 0x34e   : > { %v926_v5 = vpack.c.bf16 %v1436_v52, %v1435_v3  ;;  %v891_v58 = vpop.f32.mrb[15].mxu0  ;;  %1448 = vmatpush3.bf16.msra.mxu1 %v924_v0 }
 0x34f   : > { %v925_v6 = vpack.c.bf16 %v891_v58, %v888_v4 }
 0x351   : > { %1449 = vmatprep.subr.bf16.mxu1 %v925_v6 }
 0x352   : > { %1450 = vmatpush3.bf16.msra.mxu1 %v925_v6 }
 0x353   : > { %1451 = vmatprep.subr.bf16.mxu1 %v926_v5 }
 0x356   : > { %1452 = vmatpush3.bf16.msra.mxu1 %v926_v5 }
 0x359   : > { %1454 = vmatmul.mubr.bf16.vlgmr.msra.gmra.mrb[0].mxu1 %v1630_v7 }
 0x35a   : > { %1457 = vmatprep.mubr.bf16.mxu1 %v1631_v8 }
 0x361   : > { %1458 = vmatmul.mubr.bf16.gmra.mrb[4].mxu1 %v1632_v9 }
 0x362   : > { %1461 = vmatprep.mubr.bf16.mxu1 %v1633_v56 }
 0x369   : > { %1462 = vmatmul.mubr.bf16.gmra.mrb[8].mxu1 %v1634_v60 }
 0x36a   : > { %1465 = vmatprep.mubr.bf16.mxu1 %v1635_v10 }
 0x371   : > { %1466 = vmatmul.mubr.bf16.gmra.mrb[12].mxu1 %v1636_v11 }
 0x372   : > { %1764 = shalt.err (!%p1761_p3)
}
 0x373   : > { %s1765_s16 = scalar_lea.hbm %s2276_s6, 2048 }
 0x374   : > { %p1766_p4 = scmp.ne.s32.totalorder %s2276_s6, %s1765_s16  ;;  %p1771_p7 = scmp.lt.u32.totalorder %s1765_s16, %s2276_s6 }
 0x376   : > { %p1767_p2 = pnand %p1766_p4, %p1528_p12 }
 0x378   : > { %p1768_p6 = pneg %p1767_p2 }
 0x37a   : > { %p1773_p11 = pnand %p1771_p7, %p1768_p6 }
 0x37c   : > { %1776 = shalt.err (!%p1773_p11)
}
 0x37d   : > { %s1866_s10 = smov 128   ;;  %s1867_s18 = smov 8   ;;  %v1270_v57 = vld [vmem:[%s311_s11] ss:$0 sm:$0xff] }
 0x37e   : > { %1502 = dma.vmem_to_hbm [thread:$0]  (%p1528_p12), %s1131_s15, 2048, %s2276_s6, [#allocation11], %s1866_s10, %s1866_s10, %s1867_s18  }
 0x37f   : > { %s1868_s8 = smov [#allocation9]  }
 0x380   : > { %s1117_s26 = sshll.u32 %s1868_s8, 4  ;;  %s1118_s26 = int_to_ptr.vmem [resolvable:$true] %s1117_s26 }
 0x381   : > { %s1777_s30 = scalar_lea.vmem %s1118_s26, 2048  ;;  %p1784_p0 = scmp.lt.s32.totalorder %s1118_s26, %s1118_s26 }
 0x382   : > { %p1778_p13 = scmp.ne.s32.totalorder %s1118_s26, %s1777_s30  ;;  %p1785_p5 = scmp.lt.s32.totalorder %s1777_s30, %s1777_s30 }
 0x384   : > { %p1779_p8 = pnand %p1778_p13, %p1528_p12  ;;  %p1786_p9 = por %p1785_p5, %p1784_p0 }
 0x386   : > { %p1780_p10 = pneg %p1779_p8 }
 0x388   : > { %p1787_p1 = pnand %p1786_p9, %p1780_p10 }
 0x42c   : > { %v1455_v61 = vpop.f32.mrb[0].mxu1 }
 0x42d   : > { %v1025_v12 = vadd.f32 %v1455_v61, %v1270_v57  ;;  %v1016_v53 = vpop.f32.mrb[1].mxu1 }
 0x42e   : > { %v1017_v59 = vadd.f32 %v1270_v57, %v1016_v53  ;;  %v1456_v13 = vpop.f32.mrb[2].mxu1 }
 0x42f   : > { %v1081_v14 = vmax.f32 %v1025_v12, 0.0  ;;  %v1028_v15 = vadd.f32 %v1456_v13, %v1270_v57  ;;  %v1019_v16 = vpop.f32.mrb[3].mxu1 }
 0x430   : > { %v1079_v17 = vmax.f32 %v1017_v59, 0.0  ;;  %v1020_v18 = vadd.f32 %v1270_v57, %v1019_v16 }
 0x431   : > { %1097 = vst [vmem:[#allocation9 + $0x10] sm:$0xff] %v1081_v14  ;;  %v1082_v19 = vmax.f32 %v1028_v15, 0.0 }
 0x432   : > { %1095 = vst [vmem:[#allocation9] sm:$0xff] %v1079_v17  ;;  %v1080_v20 = vmax.f32 %v1020_v18, 0.0 }
 0x433   : > { %1098 = vst [vmem:[#allocation9 + $0x18] sm:$0xff] %v1082_v19 }
 0x434   : > { %1096 = vst [vmem:[#allocation9 + $0x8] sm:$0xff] %v1080_v20  ;;  %v1459_v21 = vpop.f32.mrb[4].mxu1 }
 0x435   : > { %v1041_v22 = vadd.f32 %v1459_v21, %v1270_v57  ;;  %v1032_v23 = vpop.f32.mrb[5].mxu1 }
 0x436   : > { %v1033_v24 = vadd.f32 %v1270_v57, %v1032_v23  ;;  %v1460_v25 = vpop.f32.mrb[6].mxu1 }
 0x437   : > { %v1085_v26 = vmax.f32 %v1041_v22, 0.0  ;;  %v1044_v27 = vadd.f32 %v1460_v25, %v1270_v57  ;;  %v1035_v28 = vpop.f32.mrb[7].mxu1 }
 0x438   : > { %v1083_v29 = vmax.f32 %v1033_v24, 0.0  ;;  %v1036_v30 = vadd.f32 %v1270_v57, %v1035_v28 }
 0x439   : > { %1101 = vst [vmem:[#allocation9 + $0x30] sm:$0xff] %v1085_v26  ;;  %v1086_v31 = vmax.f32 %v1044_v27, 0.0 }
 0x43a   : > { %1099 = vst [vmem:[#allocation9 + $0x20] sm:$0xff] %v1083_v29  ;;  %v1084_v32 = vmax.f32 %v1036_v30, 0.0 }
 0x43b   : > { %1102 = vst [vmem:[#allocation9 + $0x38] sm:$0xff] %v1086_v31 }
 0x43c   : > { %1100 = vst [vmem:[#allocation9 + $0x28] sm:$0xff] %v1084_v32  ;;  %v1463_v33 = vpop.f32.mrb[8].mxu1 }
 0x43d   : > { %v1057_v34 = vadd.f32 %v1463_v33, %v1270_v57  ;;  %v1048_v35 = vpop.f32.mrb[9].mxu1 }
 0x43e   : > { %v1049_v36 = vadd.f32 %v1270_v57, %v1048_v35  ;;  %v1464_v37 = vpop.f32.mrb[10].mxu1 }
 0x43f   : > { %v1089_v38 = vmax.f32 %v1057_v34, 0.0  ;;  %v1060_v39 = vadd.f32 %v1464_v37, %v1270_v57  ;;  %v1051_v40 = vpop.f32.mrb[11].mxu1 }
 0x440   : > { %v1087_v41 = vmax.f32 %v1049_v36, 0.0  ;;  %v1052_v42 = vadd.f32 %v1270_v57, %v1051_v40 }
 0x441   : > { %1105 = vst [vmem:[#allocation9 + $0x50] sm:$0xff] %v1089_v38  ;;  %v1090_v44 = vmax.f32 %v1060_v39, 0.0 }
 0x442   : > { %1103 = vst [vmem:[#allocation9 + $0x40] sm:$0xff] %v1087_v41  ;;  %v1088_v45 = vmax.f32 %v1052_v42, 0.0 }
 0x443   : > { %1106 = vst [vmem:[#allocation9 + $0x58] sm:$0xff] %v1090_v44 }
 0x444   : > { %1104 = vst [vmem:[#allocation9 + $0x48] sm:$0xff] %v1088_v45  ;;  %v1467_v43 = vpop.f32.mrb[12].mxu1 }
 0x445   : > { %v1073_v46 = vadd.f32 %v1467_v43, %v1270_v57  ;;  %v1064_v47 = vpop.f32.mrb[13].mxu1 }
 0x446   : > { %v1065_v50 = vadd.f32 %v1270_v57, %v1064_v47  ;;  %v1468_v51 = vpop.f32.mrb[14].mxu1 }
 0x447   : > { %v1093_v54 = vmax.f32 %v1073_v46, 0.0  ;;  %v1076_v55 = vadd.f32 %v1468_v51, %v1270_v57  ;;  %v1067_v62 = vpop.f32.mrb[15].mxu1 }
 0x448   : > { %v1091_v48 = vmax.f32 %v1065_v50, 0.0  ;;  %v1068_v63 = vadd.f32 %v1270_v57, %v1067_v62 }
 0x449   : > { %1109 = vst [vmem:[#allocation9 + $0x70] sm:$0xff] %v1093_v54  ;;  %v1094_v49 = vmax.f32 %v1076_v55, 0.0 }
 0x44a   : > { %1107 = vst [vmem:[#allocation9 + $0x60] sm:$0xff] %v1091_v48  ;;  %v1092_v0 = vmax.f32 %v1068_v63, 0.0 }
 0x44b   : > { %1110 = vst [vmem:[#allocation9 + $0x78] sm:$0xff] %v1094_v49 }
 0x44c   : > { %1108 = vst [vmem:[#allocation9 + $0x68] sm:$0xff] %v1092_v0 }
 0x44d   : > { %1790 = shalt.err (!%p1787_p1)
}
 0x44e   : > { %s2303_s11 = sld [smem:[#allocation20_spill]] }
 0x454   : > { %s1791_s7 = scalar_lea.hbm %s2303_s11, 2048 }
 0x455   : > { %p1792_p3 = scmp.ne.s32.totalorder %s2303_s11, %s1791_s7  ;;  %p1797_p6 = scmp.lt.u32.totalorder %s1791_s7, %s2303_s11 }
 0x457   : > { %p1793_p4 = pnand %p1792_p3, %p1528_p12 }
 0x459   : > { %p1794_p2 = pneg %p1793_p4 }
 0x45b   : > { %p1799_p7 = pnand %p1797_p6, %p1794_p2 }
 0x45d   : > { %1802 = shalt.err (!%p1799_p7)
}
 0x45e   : > { %1500 = dma.vmem_to_hbm [thread:$0]  (%p1528_p12), %s1118_s26, 2048, %s2303_s11, [#allocation4], %s1866_s10, %s1866_s10, %s1867_s18  }
 0x45f   : > { %1836 = dma.done.wait (%p1528_p12), [#allocation4], 2048  }
 0x460   : > { %1838 = vsyncadd (%p1528_p12), [#allocation4], 4294965248 }
 0x461   : > { %1840 = dma.done.wait (%p1528_p12), [#allocation11], 2048  }
 0x462   : > { %1842 = vsyncadd (%p1528_p12), [#allocation11], 4294965248 }
 0x463 PF: > { %s2304_s24 = sld [smem:[#allocation18_spill]]  ;;  %s2305_s14 = sld [smem:[#allocation19_spill]] }
 0x464   : > { %s2306_s21 = smov %s1849_s22  ;;  %s2307_s22 = smov %s1853_s23 }
 0x469   : > { %p18_p11 = scmp.ge.s32.totalorder %s2304_s24, 4   ;;  %s2308_s23 = smov %s2305_s14 }
 0x46b   :  { %20 = sbr.rel (!%p18_p11) target bundleno = 7 (0x7), region = 103 }
 0x472   :  { %1150 = vsyncpa [#allocation3], 1 }
 0x473   :  { %1152 = vsyncpa [#allocation3 + $0x1], 1 }
 0x474   :  { %1153 = vsyncpa [#allocation6], 1 }
 0x475   :  { %1154 = vsyncpa [#allocation4], 1 }
 0x476   :  { %1156 = vsyncpa [#allocation4 + $0x1], 1 }
 0x477   :  { %1157 = vsyncpa [#allocation11], 1 }

</bundles_post_ra>
